<compile_context>
chip_gen: v7x
topology: tpu7x:2x2x1
jax: 0.10.0
libtpu: 0.0.40
codegen_flags: <defaults>
</compile_context>

<pallas_src>
import functools

import jax
import jax.numpy as jnp
from jax.experimental import pallas as pl
from jax.experimental.pallas import tpu as pltpu

NUM_ATOM_TYPE = 9
NUM_CHARGE = 5
NUM_CHIRALITY_TAG = 4
# GINConv edge vocab (molecular pretrain-GNN convention; self-loop bond type = 4)
NUM_BOND_TYPE = 6
NUM_BOND_DIRECTION = 3
NUM_EDGE_COMBO = NUM_BOND_TYPE * NUM_BOND_DIRECTION   # 18 (padded to 128 lanes)

LN_EPS = 1e-5  # torch.nn.LayerNorm default eps


def _ceil_to(x, m):
    return ((x + m - 1) // m) * m


# ---------------------------------------------------------------------------
# Feature probes (run once at import).
# ---------------------------------------------------------------------------
def _probe_buffered1():
    """Return pl.Buffered(1) if single-buffered BlockSpecs are supported, else None."""
    try:
        try:
            mode = pl.Buffered(1)
        except TypeError:
            mode = pl.Buffered(buffer_count=1)

        def _copy(x_ref, o_ref):
            o_ref[...] = x_ref[...] + 0.0

        x = jnp.arange(8 * 128, dtype=jnp.float32).reshape(8, 128)
        y = pl.pallas_call(
            _copy,
            out_shape=jax.ShapeDtypeStruct((8, 128), jnp.float32),
            grid=(2,),
            in_specs=[pl.BlockSpec((8, 128), lambda l: (0, 0), pipeline_mode=mode)],
            out_specs=pl.BlockSpec((8, 128), lambda l: (0, 0)),
        )(x)
        if not bool(jnp.all(jax.block_until_ready(y) == x)):
            return None
        return mode
    except Exception:
        return None


_BUF1 = _probe_buffered1()


def _vmem_cap_bytes():
    try:
        return int(pltpu.get_tpu_info().vmem_capacity_bytes)
    except Exception:
        return 64 << 20   # conservative fallback (v7x per-TC VMEM)


def _spec(shape, index_map, resident=False):
    """BlockSpec; constant-index residents get single-buffering when available."""
    if resident and _BUF1 is not None:
        return pl.BlockSpec(shape, index_map, pipeline_mode=_BUF1)
    return pl.BlockSpec(shape, index_map)


# ---------------------------------------------------------------------------
# Fused Pallas kernel: all GIN layers (+LN, +ReLU) + global mean pool + head.
# grid = (num_layer,); adj / C / pool / head weights stay VMEM-resident, the
# node features h live in a VMEM scratch carried across grid steps.
# ---------------------------------------------------------------------------
def fused_gnn_kernel(adj_ref, cnt_ref, h0_ref, eemb_ref, w1_ref, b1_ref,
                     w2_ref, b2_ref, gamma_ref, beta_ref, pool_ref,
                     wl1_ref, bl1_ref, wl2_ref, bl2_ref, out_ref, h_scr):
    layer = pl.program_id(0)
    last = pl.num_programs(0) - 1

    # Load initial node embeddings into the resident scratch on layer 0.
    @pl.when(layer == 0)
    def _():
        h_scr[...] = h0_ref[...]

    h = h_scr[...]                                        # bf16 (Np, D)

    # GIN 'add' aggregation with self-loops already folded into A and C:
    #   agg[i] = sum_{e: dst=i} (h[src(e)] + edge_emb[e]) = (A @ h + C @ E_l)[i]
    agg = (jnp.dot(adj_ref[...], h, preferred_element_type=jnp.float32)
           + jnp.dot(cnt_ref[...], eemb_ref[0], preferred_element_type=jnp.float32))

    # GIN update MLP: Linear(D, 2D) -> ReLU -> Linear(2D, D)   (bf16 MXU, f32 acc)
    z = jnp.dot(agg.astype(jnp.bfloat16), w1_ref[0],
                preferred_element_type=jnp.float32) + b1_ref[0]
    z = jnp.maximum(z, 0.0)
    h2 = jnp.dot(z.astype(jnp.bfloat16), w2_ref[0],
                 preferred_element_type=jnp.float32) + b2_ref[0]

    # LayerNorm over the embedding dim (f32, biased variance == torch.nn.LayerNorm)
    mean = jnp.mean(h2, axis=-1, keepdims=True)
    var = jnp.maximum(jnp.mean(h2 * h2, axis=-1, keepdims=True) - mean * mean, 0.0)
    rstd = jax.lax.rsqrt(var + LN_EPS)
    hn = (h2 - mean) * rstd * gamma_ref[0] + beta_ref[0]

    # All but the last GNN layer: ReLU (dropout identity in eval / drop_ratio=0).
    @pl.when(layer < last)
    def _():
        h_scr[...] = jnp.maximum(hn, 0.0).astype(jnp.bfloat16)

    # Last layer epilogue: global_mean_pool (dense P @ h) + Linear_Block head.
    @pl.when(layer == last)
    def _():
        g = jnp.dot(pool_ref[...], hn.astype(jnp.bfloat16),
                    preferred_element_type=jnp.float32)
        t = jnp.dot(g.astype(jnp.bfloat16), wl1_ref[...],
                    preferred_element_type=jnp.float32) + bl1_ref[...]
        t = jnp.maximum(t, 0.0)   # linear_drop_ratio dropout is identity in eval
        out_ref[...] = jnp.dot(t.astype(jnp.bfloat16), wl2_ref[...],
                               preferred_element_type=jnp.float32) + bl2_ref[...]


def _vmem_limit_bytes(np_, d, d2, cp, bp, dh, ncp):
    rbuf = 1 if _BUF1 is not None else 2
    resident = rbuf * (np_ * np_ * 2        # adj bf16
                       + np_ * cp * 2       # edge-combo counts bf16
                       + np_ * d * 2        # h0 bf16
                       + bp * np_ * 2       # pool bf16
                       + d * dh * 2 + dh * 4 + dh * ncp * 2 + ncp * 4)   # head
    per_layer = (cp * d * 2                 # E_l bf16
                 + d * d2 * 2 + d2 * d * 2  # w1 / w2 bf16
                 + d2 * 4 + 3 * d * 4)      # b1 / b2 / gamma / beta f32
    fixed = np_ * d * 2 + 2 * bp * ncp * 4  # carried-h scratch + buffered output
    est = resident + 2 * per_layer + fixed + (4 << 20)   # Mosaic scratch headroom
    cap = int(_vmem_cap_bytes() * 0.85)     # ~54 MiB on v7x, ~108 MiB on v5e/v6e
    return int(min(max(est, 8 << 20), cap))


def fused_gnn_call(adj, cnt, h0, eemb, w1, b1, w2, b2, gamma, beta,
                   pool, wl1, bl1, wl2, bl2):
    num_layer = int(w1.shape[0])
    np_, d = h0.shape
    cp = cnt.shape[1]
    d2 = w1.shape[2]
    dh = wl1.shape[1]
    bp, ncp = pool.shape[0], wl2.shape[1]

    flops = (num_layer * (2 * np_ * np_ * d + 2 * np_ * cp * d + 4 * np_ * d * d2)
             + 2 * bp * np_ * d + 2 * bp * d * dh + 2 * bp * dh * ncp)
    bytes_accessed = (np_ * np_ * 2 + np_ * cp * 2 + np_ * d * 2 + bp * np_ * 2
                      + d * dh * 2 + dh * 4 + dh * ncp * 2 + ncp * 4 + bp * ncp * 4
                      + num_layer * (cp * d * 2 + 4 * d * d2 * 2 + d2 * 4 + 3 * d * 4))

    return pl.pallas_call(
        fused_gnn_kernel,
        out_shape=jax.ShapeDtypeStruct((bp, ncp), jnp.float32),
        grid_spec=pltpu.PrefetchScalarGridSpec(
            num_scalar_prefetch=0,
            grid=(num_layer,),
            in_specs=[
                _spec((np_, np_), lambda l: (0, 0), resident=True),    # adj
                _spec((np_, cp), lambda l: (0, 0), resident=True),     # C counts
                _spec((np_, d), lambda l: (0, 0), resident=True),      # h0
                _spec((1, cp, d), lambda l: (l, 0, 0)),                # E_l (per layer)
                _spec((1, d, d2), lambda l: (l, 0, 0)),                # w1
                _spec((1, 1, d2), lambda l: (l, 0, 0)),                # b1
                _spec((1, d2, d), lambda l: (l, 0, 0)),                # w2
                _spec((1, 1, d), lambda l: (l, 0, 0)),                 # b2
                _spec((1, 1, d), lambda l: (l, 0, 0)),                 # gamma
                _spec((1, 1, d), lambda l: (l, 0, 0)),                 # beta
                _spec((bp, np_), lambda l: (0, 0), resident=True),     # pool
                _spec((d, dh), lambda l: (0, 0), resident=True),       # wl1
                _spec((1, dh), lambda l: (0, 0), resident=True),       # bl1
                _spec((dh, ncp), lambda l: (0, 0), resident=True),     # wl2 (padded)
                _spec((1, ncp), lambda l: (0, 0), resident=True),      # bl2 (padded)
            ],
            out_specs=pl.BlockSpec((bp, ncp), lambda l: (0, 0)),
            scratch_shapes=[pltpu.VMEM((np_, d), jnp.bfloat16)],       # carried h
        ),
        compiler_params=pltpu.CompilerParams(
            dimension_semantics=("arbitrary",),       # layer axis carries state
            vmem_limit_bytes=_vmem_limit_bytes(np_, d, d2, cp, bp, dh, ncp)),
        cost_estimate=pl.CostEstimate(flops=int(flops),
                                      transcendentals=int(num_layer * np_),
                                      bytes_accessed=int(bytes_accessed)),
    )(adj, cnt, h0, eemb, w1, b1, w2, b2, gamma, beta, pool, wl1, bl1, wl2, bl2)


# ---------------------------------------------------------------------------
# Parameter init (deterministic, Xavier-uniform style), per-layer params stacked
# ---------------------------------------------------------------------------
def _xavier(key, shape):
    fan_in, fan_out = shape[-2], shape[-1]
    bound = (6.0 / (fan_in + fan_out)) ** 0.5
    return jax.random.uniform(key, shape, jnp.float32, -bound, bound)


def init_params(key, num_layer, emb_dim, num_classes):
    ks = jax.random.split(key, 9)
    L, D = num_layer, emb_dim
    return {
        "emb1": _xavier(ks[0], (NUM_ATOM_TYPE + 1, D)),
        "emb2": _xavier(ks[1], (NUM_CHIRALITY_TAG + 1, D)),
        "emb3": _xavier(ks[2], (NUM_CHARGE + 1, D)),
        "edge_emb1": _xavier(ks[3], (L, NUM_BOND_TYPE, D)),
        "edge_emb2": _xavier(ks[4], (L, NUM_BOND_DIRECTION, D)),
        "w1": _xavier(ks[5], (L, D, 2 * D)),
        "b1": jnp.zeros((L, 1, 2 * D), jnp.float32),
        "w2": _xavier(ks[6], (L, 2 * D, D)),
        "b2": jnp.zeros((L, 1, D), jnp.float32),
        "gamma": jnp.ones((L, 1, D), jnp.float32),    # LayerNorm weight
        "beta": jnp.zeros((L, 1, D), jnp.float32),    # LayerNorm bias
        "wl1": _xavier(ks[7], (D, D // 2)),
        "bl1": jnp.zeros((1, D // 2), jnp.float32),
        "wl2": _xavier(ks[8], (D // 2, num_classes)),
        "bl2": jnp.zeros((1, num_classes), jnp.float32),
    }


# ---------------------------------------------------------------------------
# FinetunedGNN forward: embedding gathers / small scatters / padding in plain
# JAX (jit'ed); all matmuls + LayerNorm + pooling + head in one fused Pallas call.
# ---------------------------------------------------------------------------
@functools.partial(jax.jit, static_argnums=(5,))
def finetuned_gnn_forward(params, x_nodes, edge_index, edge_attr, batch, num_graphs):
    n = x_nodes.shape[0]
    d = params["emb1"].shape[1]
    L = params["w1"].shape[0]
    nc = params["wl2"].shape[1]
    dh = params["wl1"].shape[1]

    np_ = _ceil_to(n, 128)               # pad node dim for MXU-friendly tiles
    bp = _ceil_to(num_graphs, 8)         # pad graph dim to a sublane multiple
    ncp = _ceil_to(nc, 128)              # lane-dense head output
    cp = _ceil_to(NUM_EDGE_COMBO, 128)   # edge-attr-combo dim (18 -> 128)

    # node input embeddings: emb1(x[:,0]) + emb2(x[:,1]) + emb3(x[:,2])
    h0 = (params["emb1"][x_nodes[:, 0]]
          + params["emb2"][x_nodes[:, 1]]
          + params["emb3"][x_nodes[:, 2]])
    h0p = jnp.zeros((np_, d), jnp.bfloat16).at[:n].set(h0.astype(jnp.bfloat16))

    # add self-loops (GINConv behaviour): edge attr = (bond type 4, direction 0)
    ar = jnp.arange(n, dtype=jnp.int32)
    src = jnp.concatenate([edge_index[0], ar])
    dst = jnp.concatenate([edge_index[1], ar])
    ea0 = jnp.concatenate([edge_attr[:, 0], jnp.full((n,), 4, jnp.int32)])
    ea1 = jnp.concatenate([edge_attr[:, 1], jnp.zeros((n,), jnp.int32)])

    # dense adjacency A[i, j] = #edges j -> i  (bf16: small integer counts, exact)
    adj = (jnp.zeros((np_, np_), jnp.float32).at[dst, src].add(1.0)
           .astype(jnp.bfloat16))

    # per-node edge-attr-combo counts C[i, c] = #edges into i with combo c
    combo = ea0 * NUM_BOND_DIRECTION + ea1
    cnt = (jnp.zeros((np_, cp), jnp.float32).at[dst, combo].add(1.0)
           .astype(jnp.bfloat16))

    # per-layer edge-embedding table E_l[c] = edge_emb1[l, c//3] + edge_emb2[l, c%3]
    cidx = jnp.arange(NUM_EDGE_COMBO, dtype=jnp.int32)
    e_tab = (params["edge_emb1"][:, cidx // NUM_BOND_DIRECTION]
             + params["edge_emb2"][:, cidx % NUM_BOND_DIRECTION])     # (L, 18, D)
    eemb = jnp.zeros((L, cp, d), jnp.bfloat16).at[:, :NUM_EDGE_COMBO].set(
        e_tab.astype(jnp.bfloat16))

    # global_mean_pool matrix P (Bp, Np); pad rows/cols carry zero weight
    batch_p = jnp.full((np_,), bp, jnp.int32).at[:n].set(batch)
    one_hot = (batch_p[None, :] ==
               jnp.arange(bp, dtype=jnp.int32)[:, None]).astype(jnp.float32)
    pool = (one_hot / jnp.maximum(one_hot.sum(axis=1, keepdims=True), 1.0)
            ).astype(jnp.bfloat16)

    # head weights: bf16 for MXU; pad output dim to 128 lanes (slice afterwards)
    wl1 = params["wl1"].astype(jnp.bfloat16)
    wl2p = jnp.zeros((dh, ncp), jnp.bfloat16).at[:, :nc].set(
        params["wl2"].astype(jnp.bfloat16))
    bl2p = jnp.zeros((1, ncp), jnp.float32).at[:, :nc].set(params["bl2"])

    out_p = fused_gnn_call(
        adj, cnt, h0p, eemb,
        params["w1"].astype(jnp.bfloat16), params["b1"],
        params["w2"].astype(jnp.bfloat16), params["b2"],
        params["gamma"], params["beta"],
        pool, wl1, params["bl1"], wl2p, bl2p)

    return out_p[:num_graphs, :nc]


if __name__ == "__main__":
    # small shapes: 16 nodes / 32 edges across 2 graphs, emb_dim=128, 2 GIN layers
    NUM_LAYER, EMB_DIM, NUM_CLASSES = 2, 128, 1
    N, E, B = 16, 32, 2

    key = jax.random.PRNGKey(0)
    k_param, k_x1, k_x2, k_x3, k_ei, k_bt, k_bd = jax.random.split(key, 7)

    params = init_params(k_param, NUM_LAYER, EMB_DIM, NUM_CLASSES)

    x_nodes = jnp.stack(
        [jax.random.randint(k_x1, (N,), 0, NUM_ATOM_TYPE + 1),
         jax.random.randint(k_x2, (N,), 0, NUM_CHIRALITY_TAG + 1),
         jax.random.randint(k_x3, (N,), 0, NUM_CHARGE + 1)],
        axis=1).astype(jnp.int32)                                    # (N, 3)
    edge_index = jax.random.randint(k_ei, (2, E), 0, N).astype(jnp.int32)  # (2, E)
    edge_attr = jnp.stack(
        [jax.random.randint(k_bt, (E,), 0, NUM_BOND_TYPE),
         jax.random.randint(k_bd, (E,), 0, NUM_BOND_DIRECTION)],
        axis=1).astype(jnp.int32)                                    # (E, 2)
    batch = jnp.repeat(jnp.arange(B, dtype=jnp.int32), N // B)       # (N,)

    out = finetuned_gnn_forward(params, x_nodes, edge_index, edge_attr, batch, B)
    out = jax.block_until_ready(out)
    assert out.shape == (B, NUM_CLASSES) and out.dtype == jnp.float32
    assert bool(jnp.all(jnp.isfinite(out)))
    print("KERNEL_OK")
</pallas_src>

<mosaic_0001>
module attributes {stable_mosaic.version = 11 : i64} {
  func.func @_copy(%arg0: i32, %arg1: memref<8x128xf32, #tpu.memory_space<vmem>>, %arg2: memref<8x128xf32, #tpu.memory_space<vmem>>) attributes {dimension_semantics = [#tpu.dimension_semantics<arbitrary>], iteration_bounds = array<i64: 2>, scalar_prefetch = 0 : i64, scratch_operands = 0 : i64, tpu.core_type = #tpu.core_type<tc>, window_params = [{pipeline_mode = #tpu.pipeline_mode<synchronous>, transform_indices = @transform_0, window_bounds = array<i64: 8, 128>}, {pipeline_mode = #tpu.pipeline_mode<synchronous>, transform_indices = @transform_1, window_bounds = array<i64: 8, 128>}]} {
    %c0 = arith.constant 0 : index
    %c0_0 = arith.constant 0 : index
    %0 = vector.load %arg1[%c0, %c0_0] : memref<8x128xf32, #tpu.memory_space<vmem>>, vector<8x128xf32>
    %cst = arith.constant 0.000000e+00 : f32
    %1 = vector.broadcast %cst : f32 to vector<8x128xf32>
    %2 = arith.addf %0, %1 : vector<8x128xf32>
    %c0_1 = arith.constant 0 : index
    %c0_2 = arith.constant 0 : index
    %3 = vector.load %arg2[%c0_1, %c0_2] : memref<8x128xf32, #tpu.memory_space<vmem>>, vector<8x128xf32>
    tpu.vector_store %arg2[%c0_1, %c0_2], %2 {strides = array<i32>} : memref<8x128xf32, #tpu.memory_space<vmem>>, vector<8x128xf32>,
    return
  }
  func.func @transform_0(%arg0: i32) -> (i32, i32) {
    %c0_i32 = arith.constant 0 : i32
    %c0_i32_0 = arith.constant 0 : i32
    %c0_i32_1 = arith.constant 0 : i32
    return %c0_i32, %c0_i32_0 : i32, i32
  }
  func.func @transform_1(%arg0: i32) -> (i32, i32) {
    %c0_i32 = arith.constant 0 : i32
    %c0_i32_0 = arith.constant 0 : i32
    %c0_i32_1 = arith.constant 0 : i32
    return %c0_i32, %c0_i32_0 : i32, i32
  }
}

module attributes {stable_mosaic.version = 11 : i64} {
  func.func private @main(%arg0: i32) attributes {dimension_semantics = [#tpu.dimension_semantics<core_parallel>], iteration_bounds = array<i64: 2>, tpu.core_type = #tpu.core_type<sc_scalar_subcore>, window_params = []} {
    return
  }
}

module attributes {stable_mosaic.version = 11 : i64} {
  func.func private @main(%arg0: i32) attributes {dimension_semantics = [#tpu.dimension_semantics<core_parallel>], iteration_bounds = array<i64: 2>, tpu.core_type = #tpu.core_type<sc_scalar_subcore>, window_params = []} {
    return
  }
}

module attributes {stable_mosaic.version = 11 : i64} {
  func.func @fused_gnn_kernel(%arg0: i32, %arg1: memref<128x128xbf16, #tpu.memory_space<vmem>>, %arg2: memref<128x128xbf16, #tpu.memory_space<vmem>>, %arg3: memref<128x128xbf16, #tpu.memory_space<vmem>>, %arg4: memref<1x128x128xbf16, #tpu.memory_space<vmem>>, %arg5: memref<1x128x256xbf16, #tpu.memory_space<vmem>>, %arg6: memref<1x1x256xf32, #tpu.memory_space<vmem>>, %arg7: memref<1x256x128xbf16, #tpu.memory_space<vmem>>, %arg8: memref<1x1x128xf32, #tpu.memory_space<vmem>>, %arg9: memref<1x1x128xf32, #tpu.memory_space<vmem>>, %arg10: memref<1x1x128xf32, #tpu.memory_space<vmem>>, %arg11: memref<8x128xbf16, #tpu.memory_space<vmem>>, %arg12: memref<128x64xbf16, #tpu.memory_space<vmem>>, %arg13: memref<1x64xf32, #tpu.memory_space<vmem>>, %arg14: memref<64x128xbf16, #tpu.memory_space<vmem>>, %arg15: memref<1x128xf32, #tpu.memory_space<vmem>>, %arg16: memref<8x128xf32, #tpu.memory_space<vmem>>, %arg17: memref<128x128xbf16, #tpu.memory_space<vmem>>) attributes {dimension_semantics = [#tpu.dimension_semantics<arbitrary>], iteration_bounds = array<i64: 2>, scalar_prefetch = 0 : i64, scratch_operands = 1 : i64, tpu.core_type = #tpu.core_type<tc>, window_params = [{pipeline_mode = #tpu.pipeline_mode<synchronous>, transform_indices = @transform_0, window_bounds = array<i64: 128, 128>}, {pipeline_mode = #tpu.pipeline_mode<synchronous>, transform_indices = @transform_1, window_bounds = array<i64: 128, 128>}, {pipeline_mode = #tpu.pipeline_mode<synchronous>, transform_indices = @transform_2, window_bounds = array<i64: 128, 128>}, {transform_indices = @transform_3, window_bounds = array<i64: 1, 128, 128>}, {transform_indices = @transform_4, window_bounds = array<i64: 1, 128, 256>}, {transform_indices = @transform_5, window_bounds = array<i64: 1, 1, 256>}, {transform_indices = @transform_6, window_bounds = array<i64: 1, 256, 128>}, {transform_indices = @transform_7, window_bounds = array<i64: 1, 1, 128>}, {transform_indices = @transform_8, window_bounds = array<i64: 1, 1, 128>}, {transform_indices = @transform_9, window_bounds = array<i64: 1, 1, 128>}, {pipeline_mode = #tpu.pipeline_mode<synchronous>, transform_indices = @transform_10, window_bounds = array<i64: 8, 128>}, {pipeline_mode = #tpu.pipeline_mode<synchronous>, transform_indices = @transform_11, window_bounds = array<i64: 128, 64>}, {pipeline_mode = #tpu.pipeline_mode<synchronous>, transform_indices = @transform_12, window_bounds = array<i64: 1, 64>}, {pipeline_mode = #tpu.pipeline_mode<synchronous>, transform_indices = @transform_13, window_bounds = array<i64: 64, 128>}, {pipeline_mode = #tpu.pipeline_mode<synchronous>, transform_indices = @transform_14, window_bounds = array<i64: 1, 128>}, {pipeline_mode = #tpu.pipeline_mode<synchronous>, transform_indices = @transform_15, window_bounds = array<i64: 8, 128>}]} {
    %c0_i32 = arith.constant 0 : i32
    %0 = arith.cmpi eq, %arg0, %c0_i32 : i32
    %1 = arith.extui %0 : i1 to i32
    %c0_i32_0 = arith.constant 0 : i32
    %2 = arith.cmpi ne, %1, %c0_i32_0 : i32
    scf.if %2 {
      %c0_40 = arith.constant 0 : index
      %c0_41 = arith.constant 0 : index
      %63 = vector.load %arg3[%c0_40, %c0_41] : memref<128x128xbf16, #tpu.memory_space<vmem>>, vector<128x128xbf16>
      %c0_42 = arith.constant 0 : index
      %c0_43 = arith.constant 0 : index
      %64 = vector.load %arg17[%c0_42, %c0_43] : memref<128x128xbf16, #tpu.memory_space<vmem>>, vector<128x128xbf16>
      tpu.vector_store %arg17[%c0_42, %c0_43], %63 {strides = array<i32>} : memref<128x128xbf16, #tpu.memory_space<vmem>>, vector<128x128xbf16>,
    } else {
    }
    %c0 = arith.constant 0 : index
    %c0_1 = arith.constant 0 : index
    %3 = vector.load %arg17[%c0, %c0_1] : memref<128x128xbf16, #tpu.memory_space<vmem>>, vector<128x128xbf16>
    %c0_2 = arith.constant 0 : index
    %c0_3 = arith.constant 0 : index
    %4 = vector.load %arg1[%c0_2, %c0_3] : memref<128x128xbf16, #tpu.memory_space<vmem>>, vector<128x128xbf16>
    %cst = arith.constant dense<0.000000e+00> : vector<128x128xf32>
    %5 = tpu.matmul %4, %3, %cst {dimension_numbers = #tpu.dot_dimension_numbers<[1], [0], [0], [1], [0, 0, 1, 1], [], []>} : vector<128x128xbf16>, vector<128x128xbf16>, vector<128x128xf32> -> vector<128x128xf32>
    %c0_4 = arith.constant 0 : index
    %c0_5 = arith.constant 0 : index
    %6 = vector.load %arg2[%c0_4, %c0_5] : memref<128x128xbf16, #tpu.memory_space<vmem>>, vector<128x128xbf16>
    %c0_6 = arith.constant 0 : index
    %c0_7 = arith.constant 0 : index
    %c0_8 = arith.constant 0 : index
    %7 = vector.load %arg4[%c0_6, %c0_7, %c0_8] : memref<1x128x128xbf16, #tpu.memory_space<vmem>>, vector<1x128x128xbf16>
    %8 = vector.shape_cast %7 : vector<1x128x128xbf16> to vector<128x128xbf16>
    %cst_9 = arith.constant dense<0.000000e+00> : vector<128x128xf32>
    %9 = tpu.matmul %6, %8, %cst_9 {dimension_numbers = #tpu.dot_dimension_numbers<[1], [0], [0], [1], [0, 0, 1, 1], [], []>} : vector<128x128xbf16>, vector<128x128xbf16>, vector<128x128xf32> -> vector<128x128xf32>
    %10 = arith.addf %5, %9 : vector<128x128xf32>
    %11 = arith.truncf %10 : vector<128x128xf32> to vector<128x128xbf16>
    %c0_10 = arith.constant 0 : index
    %c0_11 = arith.constant 0 : index
    %c0_12 = arith.constant 0 : index
    %12 = vector.load %arg5[%c0_10, %c0_11, %c0_12] : memref<1x128x256xbf16, #tpu.memory_space<vmem>>, vector<1x128x256xbf16>
    %13 = vector.shape_cast %12 : vector<1x128x256xbf16> to vector<128x256xbf16>
    %cst_13 = arith.constant dense<0.000000e+00> : vector<128x256xf32>
    %14 = tpu.matmul %11, %13, %cst_13 {dimension_numbers = #tpu.dot_dimension_numbers<[1], [0], [0], [1], [0, 0, 1, 1], [], []>} : vector<128x128xbf16>, vector<128x256xbf16>, vector<128x256xf32> -> vector<128x256xf32>
    %c0_14 = arith.constant 0 : index
    %c0_15 = arith.constant 0 : index
    %c0_16 = arith.constant 0 : index
    %15 = vector.load %arg6[%c0_14, %c0_15, %c0_16] : memref<1x1x256xf32, #tpu.memory_space<vmem>>, vector<1x1x256xf32>
    %16 = vector.shape_cast %15 : vector<1x1x256xf32> to vector<1x256xf32>
    %17 = vector.broadcast %16 : vector<1x256xf32> to vector<128x256xf32>
    %18 = arith.addf %14, %17 : vector<128x256xf32>
    %cst_17 = arith.constant 0.000000e+00 : f32
    %19 = vector.broadcast %cst_17 : f32 to vector<128x256xf32>
    %20 = arith.maximumf %18, %19 : vector<128x256xf32>
    %21 = arith.truncf %20 : vector<128x256xf32> to vector<128x256xbf16>
    %c0_18 = arith.constant 0 : index
    %c0_19 = arith.constant 0 : index
    %c0_20 = arith.constant 0 : index
    %22 = vector.load %arg7[%c0_18, %c0_19, %c0_20] : memref<1x256x128xbf16, #tpu.memory_space<vmem>>, vector<1x256x128xbf16>
    %23 = vector.shape_cast %22 : vector<1x256x128xbf16> to vector<256x128xbf16>
    %cst_21 = arith.constant dense<0.000000e+00> : vector<128x128xf32>
    %24 = tpu.matmul %21, %23, %cst_21 {dimension_numbers = #tpu.dot_dimension_numbers<[1], [0], [0], [1], [0, 0, 1, 1], [], []>} : vector<128x256xbf16>, vector<256x128xbf16>, vector<128x128xf32> -> vector<128x128xf32>
    %c0_22 = arith.constant 0 : index
    %c0_23 = arith.constant 0 : index
    %c0_24 = arith.constant 0 : index
    %25 = vector.load %arg8[%c0_22, %c0_23, %c0_24] : memref<1x1x128xf32, #tpu.memory_space<vmem>>, vector<1x1x128xf32>
    %26 = vector.shape_cast %25 : vector<1x1x128xf32> to vector<1x128xf32>
    %27 = vector.broadcast %26 : vector<1x128xf32> to vector<128x128xf32>
    %28 = arith.addf %24, %27 : vector<128x128xf32>
    %cst_25 = arith.constant dense<0.000000e+00> : vector<128xf32>
    %29 = vector.multi_reduction <add>, %28, %cst_25 [1] : vector<128x128xf32> to vector<128xf32>
    %30 = vector.shape_cast %29 : vector<128xf32> to vector<128x1xf32>
    %cst_26 = arith.constant 1.280000e+02 : f32
    %31 = vector.broadcast %cst_26 : f32 to vector<128x1xf32>
    %32 = arith.divf %30, %31 : vector<128x1xf32>
    %33 = arith.mulf %28, %28 : vector<128x128xf32>
    %cst_27 = arith.constant dense<0.000000e+00> : vector<128xf32>
    %34 = vector.multi_reduction <add>, %33, %cst_27 [1] : vector<128x128xf32> to vector<128xf32>
    %35 = vector.shape_cast %34 : vector<128xf32> to vector<128x1xf32>
    %cst_28 = arith.constant 1.280000e+02 : f32
    %36 = vector.broadcast %cst_28 : f32 to vector<128x1xf32>
    %37 = arith.divf %35, %36 : vector<128x1xf32>
    %38 = arith.mulf %32, %32 : vector<128x1xf32>
    %39 = arith.subf %37, %38 : vector<128x1xf32>
    %cst_29 = arith.constant 0.000000e+00 : f32
    %40 = vector.broadcast %cst_29 : f32 to vector<128x1xf32>
    %41 = arith.maximumf %39, %40 : vector<128x1xf32>
    %cst_30 = arith.constant 9.99999974E-6 : f32
    %42 = vector.broadcast %cst_30 : f32 to vector<128x1xf32>
    %43 = arith.addf %41, %42 : vector<128x1xf32>
    %44 = math.rsqrt %43 : vector<128x1xf32>
    %45 = vector.broadcast %32 : vector<128x1xf32> to vector<128x128xf32>
    %46 = arith.subf %28, %45 : vector<128x128xf32>
    %47 = vector.broadcast %44 : vector<128x1xf32> to vector<128x128xf32>
    %48 = arith.mulf %46, %47 : vector<128x128xf32>
    %c0_31 = arith.constant 0 : index
    %c0_32 = arith.constant 0 : index
    %c0_33 = arith.constant 0 : index
    %49 = vector.load %arg9[%c0_31, %c0_32, %c0_33] : memref<1x1x128xf32, #tpu.memory_space<vmem>>, vector<1x1x128xf32>
    %50 = vector.shape_cast %49 : vector<1x1x128xf32> to vector<1x128xf32>
    %51 = vector.broadcast %50 : vector<1x128xf32> to vector<128x128xf32>
    %52 = arith.mulf %48, %51 : vector<128x128xf32>
    %c0_34 = arith.constant 0 : index
    %c0_35 = arith.constant 0 : index
    %c0_36 = arith.constant 0 : index
    %53 = vector.load %arg10[%c0_34, %c0_35, %c0_36] : memref<1x1x128xf32, #tpu.memory_space<vmem>>, vector<1x1x128xf32>
    %54 = vector.shape_cast %53 : vector<1x1x128xf32> to vector<1x128xf32>
    %55 = vector.broadcast %54 : vector<1x128xf32> to vector<128x128xf32>
    %56 = arith.addf %52, %55 : vector<128x128xf32>
    %c1_i32 = arith.constant 1 : i32
    %57 = arith.cmpi slt, %arg0, %c1_i32 : i32
    %58 = arith.extui %57 : i1 to i32
    %c0_i32_37 = arith.constant 0 : i32
    %59 = arith.cmpi ne, %58, %c0_i32_37 : i32
    scf.if %59 {
      %cst_40 = arith.constant 0.000000e+00 : f32
      %63 = vector.broadcast %cst_40 : f32 to vector<128x128xf32>
      %64 = arith.maximumf %56, %63 : vector<128x128xf32>
      %65 = arith.truncf %64 : vector<128x128xf32> to vector<128x128xbf16>
      %c0_41 = arith.constant 0 : index
      %c0_42 = arith.constant 0 : index
      %66 = vector.load %arg17[%c0_41, %c0_42] : memref<128x128xbf16, #tpu.memory_space<vmem>>, vector<128x128xbf16>
      tpu.vector_store %arg17[%c0_41, %c0_42], %65 {strides = array<i32>} : memref<128x128xbf16, #tpu.memory_space<vmem>>, vector<128x128xbf16>,
    } else {
    }
    %c1_i32_38 = arith.constant 1 : i32
    %60 = arith.cmpi eq, %arg0, %c1_i32_38 : i32
    %61 = arith.extui %60 : i1 to i32
    %c0_i32_39 = arith.constant 0 : i32
    %62 = arith.cmpi ne, %61, %c0_i32_39 : i32
    scf.if %62 {
      %c0_40 = arith.constant 0 : index
      %c0_41 = arith.constant 0 : index
      %63 = vector.load %arg11[%c0_40, %c0_41] : memref<8x128xbf16, #tpu.memory_space<vmem>>, vector<8x128xbf16>
      %64 = arith.truncf %56 : vector<128x128xf32> to vector<128x128xbf16>
      %cst_42 = arith.constant dense<0.000000e+00> : vector<8x128xf32>
      %65 = tpu.matmul %63, %64, %cst_42 {dimension_numbers = #tpu.dot_dimension_numbers<[1], [0], [0], [1], [0, 0, 1, 1], [], []>} : vector<8x128xbf16>, vector<128x128xbf16>, vector<8x128xf32> -> vector<8x128xf32>
      %66 = arith.truncf %65 : vector<8x128xf32> to vector<8x128xbf16>
      %c0_43 = arith.constant 0 : index
      %c0_44 = arith.constant 0 : index
      %67 = vector.load %arg12[%c0_43, %c0_44] : memref<128x64xbf16, #tpu.memory_space<vmem>>, vector<128x64xbf16>
      %cst_45 = arith.constant dense<0.000000e+00> : vector<8x64xf32>
      %68 = tpu.matmul %66, %67, %cst_45 {dimension_numbers = #tpu.dot_dimension_numbers<[1], [0], [0], [1], [0, 0, 1, 1], [], []>} : vector<8x128xbf16>, vector<128x64xbf16>, vector<8x64xf32> -> vector<8x64xf32>
      %c0_46 = arith.constant 0 : index
      %c0_47 = arith.constant 0 : index
      %69 = vector.load %arg13[%c0_46, %c0_47] : memref<1x64xf32, #tpu.memory_space<vmem>>, vector<1x64xf32>
      %70 = vector.broadcast %69 : vector<1x64xf32> to vector<8x64xf32>
      %71 = arith.addf %68, %70 : vector<8x64xf32>
      %cst_48 = arith.constant 0.000000e+00 : f32
      %72 = vector.broadcast %cst_48 : f32 to vector<8x64xf32>
      %73 = arith.maximumf %71, %72 : vector<8x64xf32>
      %74 = arith.truncf %73 : vector<8x64xf32> to vector<8x64xbf16>
      %c0_49 = arith.constant 0 : index
      %c0_50 = arith.constant 0 : index
      %75 = vector.load %arg14[%c0_49, %c0_50] : memref<64x128xbf16, #tpu.memory_space<vmem>>, vector<64x128xbf16>
      %cst_51 = arith.constant dense<0.000000e+00> : vector<8x128xf32>
      %76 = tpu.matmul %74, %75, %cst_51 {dimension_numbers = #tpu.dot_dimension_numbers<[1], [0], [0], [1], [0, 0, 1, 1], [], []>} : vector<8x64xbf16>, vector<64x128xbf16>, vector<8x128xf32> -> vector<8x128xf32>
      %c0_52 = arith.constant 0 : index
      %c0_53 = arith.constant 0 : index
      %77 = vector.load %arg15[%c0_52, %c0_53] : memref<1x128xf32, #tpu.memory_space<vmem>>, vector<1x128xf32>
      %78 = vector.broadcast %77 : vector<1x128xf32> to vector<8x128xf32>
      %79 = arith.addf %76, %78 : vector<8x128xf32>
      %c0_54 = arith.constant 0 : index
      %c0_55 = arith.constant 0 : index
      %80 = vector.load %arg16[%c0_54, %c0_55] : memref<8x128xf32, #tpu.memory_space<vmem>>, vector<8x128xf32>
      tpu.vector_store %arg16[%c0_54, %c0_55], %79 {strides = array<i32>} : memref<8x128xf32, #tpu.memory_space<vmem>>, vector<8x128xf32>,
    } else {
    }
    return
  }
  func.func @transform_0(%arg0: i32) -> (i32, i32) {
    %c0_i32 = arith.constant 0 : i32
    %c0_i32_0 = arith.constant 0 : i32
    %c0_i32_1 = arith.constant 0 : i32
    return %c0_i32, %c0_i32_0 : i32, i32
  }
  func.func @transform_1(%arg0: i32) -> (i32, i32) {
    %c0_i32 = arith.constant 0 : i32
    %c0_i32_0 = arith.constant 0 : i32
    %c0_i32_1 = arith.constant 0 : i32
    return %c0_i32, %c0_i32_0 : i32, i32
  }
  func.func @transform_2(%arg0: i32) -> (i32, i32) {
    %c0_i32 = arith.constant 0 : i32
    %c0_i32_0 = arith.constant 0 : i32
    %c0_i32_1 = arith.constant 0 : i32
    return %c0_i32, %c0_i32_0 : i32, i32
  }
  func.func @transform_3(%arg0: i32) -> (i32, i32, i32) {
    %c0_i32 = arith.constant 0 : i32
    %c0_i32_0 = arith.constant 0 : i32
    %c0_i32_1 = arith.constant 0 : i32
    return %arg0, %c0_i32, %c0_i32_0 : i32, i32, i32
  }
  func.func @transform_4(%arg0: i32) -> (i32, i32, i32) {
    %c0_i32 = arith.constant 0 : i32
    %c0_i32_0 = arith.constant 0 : i32
    %c0_i32_1 = arith.constant 0 : i32
    return %arg0, %c0_i32, %c0_i32_0 : i32, i32, i32
  }
  func.func @transform_5(%arg0: i32) -> (i32, i32, i32) {
    %c0_i32 = arith.constant 0 : i32
    %c0_i32_0 = arith.constant 0 : i32
    %c0_i32_1 = arith.constant 0 : i32
    return %arg0, %c0_i32, %c0_i32_0 : i32, i32, i32
  }
  func.func @transform_6(%arg0: i32) -> (i32, i32, i32) {
    %c0_i32 = arith.constant 0 : i32
    %c0_i32_0 = arith.constant 0 : i32
    %c0_i32_1 = arith.constant 0 : i32
    return %arg0, %c0_i32, %c0_i32_0 : i32, i32, i32
  }
  func.func @transform_7(%arg0: i32) -> (i32, i32, i32) {
    %c0_i32 = arith.constant 0 : i32
    %c0_i32_0 = arith.constant 0 : i32
    %c0_i32_1 = arith.constant 0 : i32
    return %arg0, %c0_i32, %c0_i32_0 : i32, i32, i32
  }
  func.func @transform_8(%arg0: i32) -> (i32, i32, i32) {
    %c0_i32 = arith.constant 0 : i32
    %c0_i32_0 = arith.constant 0 : i32
    %c0_i32_1 = arith.constant 0 : i32
    return %arg0, %c0_i32, %c0_i32_0 : i32, i32, i32
  }
  func.func @transform_9(%arg0: i32) -> (i32, i32, i32) {
    %c0_i32 = arith.constant 0 : i32
    %c0_i32_0 = arith.constant 0 : i32
    %c0_i32_1 = arith.constant 0 : i32
    return %arg0, %c0_i32, %c0_i32_0 : i32, i32, i32
  }
  func.func @transform_10(%arg0: i32) -> (i32, i32) {
    %c0_i32 = arith.constant 0 : i32
    %c0_i32_0 = arith.constant 0 : i32
    %c0_i32_1 = arith.constant 0 : i32
    return %c0_i32, %c0_i32_0 : i32, i32
  }
  func.func @transform_11(%arg0: i32) -> (i32, i32) {
    %c0_i32 = arith.constant 0 : i32
    %c0_i32_0 = arith.constant 0 : i32
    %c0_i32_1 = arith.constant 0 : i32
    return %c0_i32, %c0_i32_0 : i32, i32
  }
  func.func @transform_12(%arg0: i32) -> (i32, i32) {
    %c0_i32 = arith.constant 0 : i32
    %c0_i32_0 = arith.constant 0 : i32
    %c0_i32_1 = arith.constant 0 : i32
    return %c0_i32, %c0_i32_0 : i32, i32
  }
  func.func @transform_13(%arg0: i32) -> (i32, i32) {
    %c0_i32 = arith.constant 0 : i32
    %c0_i32_0 = arith.constant 0 : i32
    %c0_i32_1 = arith.constant 0 : i32
    return %c0_i32, %c0_i32_0 : i32, i32
  }
  func.func @transform_14(%arg0: i32) -> (i32, i32) {
    %c0_i32 = arith.constant 0 : i32
    %c0_i32_0 = arith.constant 0 : i32
    %c0_i32_1 = arith.constant 0 : i32
    return %c0_i32, %c0_i32_0 : i32, i32
  }
  func.func @transform_15(%arg0: i32) -> (i32, i32) {
    %c0_i32 = arith.constant 0 : i32
    %c0_i32_0 = arith.constant 0 : i32
    %c0_i32_1 = arith.constant 0 : i32
    return %c0_i32, %c0_i32_0 : i32, i32
  }
}

</mosaic_0001>

<bundles_post_ra>
// kernel: tpu_custom_call.1
= control target key start
LH: loop header
LB: loop body
LE: loop exit
PB: predicated region body
PF: predicated region fallthrough
CT: control target
= control target key end

     0   :  { %6 = vsyncpa [#allocation3], 0  ;;  %s341_s0 = inlined_call_operand.hbm [shape: f32[8,128], index: 0, kind: input, shape index: {}]   ;;  %s342_s1 = inlined_call_operand.hbm [shape: f32[8,128], index: 1, kind: output, shape index: {}]  }
   0x1   :  { %7 = vsyncpa [#allocation4], 0  ;;  %s262_s6 = smov 0  }
   0x2 LB: > { %s145_s7 = sadd.s32 4294967295, %s248_s6   ;;  %p146_p0 = scmp.ge.s32.totalorder %s248_s6, 1  ;;  %s248_s6 = sphi %s262_s6, %s13_s6  }
   0x3   : > { %p60_p1 = scmp.lt.s32.totalorder %s248_s6, 3  ;;  %p276_p3 = scmp.eq.s32.totalorder %s145_s7, 0 }
   0x4   : > { %s250_s10 = smov [#allocation2]   ;;  %s180_s15 = scalar_lea.hbm %s341_s0, 128 }
   0x5   : > { %p270_p2 = pnand %p146_p0, %p60_p1  ;;  %s73_s11 = sshll.u32 %s250_s10, 4  ;;  %s74_s11 = int_to_ptr.vmem [resolvable:$true] %s73_s11 }
   0x6   : > { %s347_s9 = scalar_select %p276_p3, 1, 0 }
   0x7   : > { %s346_s8 = scalar_select %p270_p2, 1, 0 }
   0x8   : > { %p162_p4 = pneg %p270_p2  ;;  %p181_p6 = scmp.ne.s32.totalorder %s341_s0, %s180_s15 }
   0x9   : > { %p187_p10 = scmp.lt.u32.totalorder %s180_s15, %s341_s0 }
   0xa   : > { %p284_p5 = pnand %p276_p3, %p162_p4 }
   0xc   : > { %p182_p7 = pneg %p284_p5 }
   0xe   : > { %p183_p8 = pnand %p182_p7, %p181_p6 }
  0x10   : > { %p184_p9 = pneg %p183_p8 }
  0x12   : > { %p189_p11 = pnand %p187_p10, %p184_p9 }
  0x14   : > { %192 = shalt.err (!%p189_p11)
}
  0x15   : > { %s193_s20 = scalar_lea.vmem %s74_s11, 128  ;;  %p201_p1 = scmp.lt.s32.totalorder %s74_s11, %s74_s11 }
  0x16   : > { %p194_p12 = scmp.ne.s32.totalorder %s74_s11, %s193_s20  ;;  %p202_p4 = scmp.lt.s32.totalorder %s193_s20, %s193_s20 }
  0x18   : > { %p196_p13 = pnand %p194_p12, %p182_p7  ;;  %p203_p3 = por %p202_p4, %p201_p1 }
  0x1a   : > { %p197_p0 = pneg %p196_p13 }
  0x1c   : > { %p204_p2 = pnand %p203_p3, %p197_p0 }
  0x1e   : > { %207 = shalt.err (!%p204_p2)
}
  0x1f   : > { %165 = dma.hbm_to_vmem [thread:$0]  (!%p284_p5), %s341_s0, 128, %s74_s11, [#allocation3]  }
  0x20   : > { %p349_p6 = scmp.ne.s32.totalorder %s346_s8, 0 }
  0x21   : > { %p350_p8 = scmp.ne.s32.totalorder (!%p349_p6), %s347_s9, 0 }
  0x22   : > { %86 = sbr.rel (%p349_p6) target bundleno = 67 (0x43), region = 24 }
  0x29   : > { %239 = dma.done.wait (%p350_p8), [#allocation3], 128  }
  0x2a   : > { %241 = vsyncadd (%p350_p8), [#allocation3], 4294967168  ;;  %s251_s23 = smov [#allocation5]   ;;  %p312_p2 = scmp.eq.s32.totalorder %s145_s7, 1  ;;  %v96_v0 = vld [vmem:[#allocation2] sm:$0xff] }
  0x2b   : > { %s106_s24 = sshll.u32 %s251_s23, 4  ;;  %98 = vst [vmem:[#allocation5] sm:$0xff] %v96_v0  ;;  %s107_s24 = int_to_ptr.vmem [resolvable:$true] %s106_s24 }
  0x2c   : > { %s208_s26 = scalar_lea.vmem %s107_s24, 128  ;;  %p215_p9 = scmp.lt.s32.totalorder %s107_s24, %s107_s24 }
  0x2d   : > { %p209_p3 = scmp.ne.s32.totalorder %s107_s24, %s208_s26  ;;  %p216_p10 = scmp.lt.s32.totalorder %s208_s26, %s208_s26 }
  0x2f   : > { %p210_p5 = pnand %p209_p3, %p312_p2  ;;  %p217_p11 = por %p216_p10, %p215_p9 }
  0x31   : > { %p211_p7 = pneg %p210_p5 }
  0x33   : > { %p218_p12 = pnand %p217_p11, %p211_p7 }
  0x35   : > { %221 = shalt.err (!%p218_p12)
}
  0x36   : > { %s222_s29 = scalar_lea.hbm %s342_s1, 128 }
  0x37   : > { %p223_p13 = scmp.ne.s32.totalorder %s342_s1, %s222_s29  ;;  %p228_p4 = scmp.lt.u32.totalorder %s222_s29, %s342_s1 }
  0x39   : > { %p224_p0 = pnand %p223_p13, %p312_p2 }
  0x3b   : > { %p225_p1 = pneg %p224_p0 }
  0x3d   : > { %p230_p6 = pnand %p228_p4, %p225_p1 }
  0x3f   : > { %233 = shalt.err (!%p230_p6)
}
  0x40   : > { %159 = dma.vmem_to_hbm [thread:$0]  (%p312_p2), %s107_s24, 128, %s342_s1, [#allocation4]  }
  0x41   : > { %243 = dma.done.wait (%p312_p2), [#allocation4], 128  }
  0x42   : > { %245 = vsyncadd (%p312_p2), [#allocation4], 4294967168 }
  0x43 PF: > { %s13_s6 = sadd.s32 1, %s248_s6  }
  0x44   : > { %p10_p8 = scmp.ge.s32.totalorder %s13_s6, 4  }
  0x46   :  { %12 = sbr.rel (!%p10_p8) target bundleno = 2 (0x2), region = 53 }
  0x4d   :  { %119 = vsyncpa [#allocation3], 1 }
  0x4e   :  { %121 = vsyncpa [#allocation3 + $0x1], 1 }
  0x4f   :  { %122 = vsyncpa [#allocation4], 1 }
  0x50   :  { %124 = vsyncpa [#allocation4 + $0x1], 1 }

// kernel: finetuned_gnn_forward.1
= control target key start
LH: loop header
LB: loop body
LE: loop exit
PB: predicated region body
PF: predicated region fallthrough
CT: control target
= control target key end

     0   :  { %s2778_s18 = smov 0   ;;  %s3353_s0 = inlined_call_operand.vmem [shape: bf16[128,128], index: 0, kind: input, shape index: {}]   ;;  %s3354_s1 = inlined_call_operand.vmem [shape: bf16[128,128], index: 1, kind: input, shape index: {}]   ;;  %s3355_s2 = inlined_call_operand.vmem [shape: bf16[128,128], index: 2, kind: input, shape index: {}]   ;;  %s3356_s3 = inlined_call_operand.vmem [shape: bf16[2,128,128], index: 3, kind: input, shape index: {}]   ;;  %s3357_s4 = inlined_call_operand.vmem [shape: bf16[2,128,256], index: 4, kind: input, shape index: {}]   ;;  %s3358_s5 = inlined_call_operand.vmem [shape: f32[2,1,256], index: 5, kind: input, shape index: {}]   ;;  %s3359_s6 = inlined_call_operand.vmem [shape: bf16[2,256,128], index: 6, kind: input, shape index: {}]   ;;  %s3360_s7 = inlined_call_operand.vmem [shape: f32[2,1,128], index: 7, kind: input, shape index: {}]   ;;  %s3361_s8 = inlined_call_operand.vmem [shape: f32[2,1,128], index: 8, kind: input, shape index: {}]   ;;  %s3362_s9 = inlined_call_operand.vmem [shape: f32[2,1,128], index: 9, kind: input, shape index: {}]   ;;  %s3363_s10 = inlined_call_operand.vmem [shape: bf16[8,128], index: 10, kind: input, shape index: {}]   ;;  %s3364_s11 = inlined_call_operand.vmem [shape: bf16[128,64], index: 11, kind: input, shape index: {}]   ;;  %s3365_s12 = inlined_call_operand.vmem [shape: f32[1,64], index: 12, kind: input, shape index: {}]   ;;  %s3366_s13 = inlined_call_operand.vmem [shape: bf16[64,128], index: 13, kind: input, shape index: {}]   ;;  %s3367_s14 = inlined_call_operand.vmem [shape: f32[1,128], index: 14, kind: input, shape index: {}]   ;;  %s3368_s15 = inlined_call_operand.vmem [shape: f32[8,128], index: 15, kind: output, shape index: {}]  }
   0x1   :  { %3371 = sst [smem:[#allocation4_spill]] %s3356_s3 }
   0x2   :  { %3372 = sst [smem:[#allocation5_spill]] %s3357_s4 }
   0x3   :  { %3373 = sst [smem:[#allocation6_spill]] %s3365_s12 }
   0x4   :  { %3374 = sst [smem:[#allocation7_spill]] %s3366_s13 }
   0x5   :  { %3375 = sst [smem:[#allocation8_spill]] %s3367_s14 }
   0x6   :  { %3376 = sst [smem:[#allocation9_spill]] %s3368_s15 }
   0x7 LB: > { %3377 = sst [smem:[#allocation3_spill]] %s2693_s18  ;;  %s2784_s19 = sadd.s32 4294967295, %s2693_s18   ;;  %s2693_s18 = sphi %s2778_s18, %s25_s18  }
   0x8   : > { %p2211_p0 = scmp.ge.s32.totalorder %s2693_s18, 1  ;;  %p485_p1 = scmp.lt.s32.totalorder %s2693_s18, 3 }
   0xa   : > { %p486_p2 = pnand %p2211_p0, %p485_p1 }
   0xb   : > { %p551_p3 = scmp.lt.s32.totalorder (!%p486_p2), %s2784_s19, 1  ;;  %s3378_s3 = sld [smem:[#allocation4_spill]] (!%p486_p2) }
   0xc   : > { %489 = sbr.rel (%p486_p2) target bundleno = 1636 (0x664), region = 80  ;;  %s3379_s4 = sld [smem:[#allocation5_spill]] (!%p486_p2) }
   0xd   : > { %p2219_p4 = scmp.ne.s32.totalorder (!%p486_p2), %s2784_s19, 0 }
  0x13   : > { %s2790_s20 = scalar_select %p551_p3, %s2784_s19, 1 }
  0x14   : > { %583 = sbr.rel (%p2219_p4) target bundleno = 27 (0x1b), region = 84  ;;  %v2571_v0 = vld [vmem:[%s3355_s2] sm:$0xff] (!%p2219_p4)   ;;  %v2572_v1 = vld [vmem:[%s3355_s2 + $0x8] sm:$0xff] (!%p2219_p4)   ;;  %v2573_v2 = vld [vmem:[%s3355_s2 + $0x10] sm:$0xff] (!%p2219_p4)  }
  0x15   : > { %s2306_s21 = sshll.u32 %s2790_s20, 6  ;;  %s2307_s22 = sshll.u32 %s2790_s20, 7  ;;  %648 = vst [vmem:[#allocation2] sm:$0xff] (!%p2219_p4), %v2571_v0  ;;  %649 = vst [vmem:[#allocation2 + $0x8] sm:$0xff] (!%p2219_p4), %v2572_v1  ;;  %v2574_v3 = vld [vmem:[%s3355_s2 + $0x18] sm:$0xff] (!%p2219_p4)   ;;  %v2575_v4 = vld [vmem:[%s3355_s2 + $0x20] sm:$0xff] (!%p2219_p4)  }
  0x16   : > { %s2797_s25 = scalar_lea.vmem %s3378_s3, %s2306_s21  ;;  %s2802_s28 = scalar_lea.vmem %s3379_s4, %s2307_s22  ;;  %650 = vst [vmem:[#allocation2 + $0x10] sm:$0xff] (!%p2219_p4), %v2573_v2  ;;  %651 = vst [vmem:[#allocation2 + $0x18] sm:$0xff] (!%p2219_p4), %v2574_v3  ;;  %v2576_v5 = vld [vmem:[%s3355_s2 + $0x28] sm:$0xff] (!%p2219_p4)   ;;  %v2577_v6 = vld [vmem:[%s3355_s2 + $0x30] sm:$0xff] (!%p2219_p4)  }
  0x17   : > { %s2216_s29 = sshll.u32 %s2790_s20, 1  ;;  %s2808_s17 = scalar_lea.vmem %s3359_s6, %s2307_s22  ;;  %652 = vst [vmem:[#allocation2 + $0x20] sm:$0xff] (!%p2219_p4), %v2575_v4  ;;  %653 = vst [vmem:[#allocation2 + $0x28] sm:$0xff] (!%p2219_p4), %v2576_v5  ;;  %v2578_v7 = vld [vmem:[%s3355_s2 + $0x38] sm:$0xff] (!%p2219_p4)  }
  0x18   : > { %s2813_s14 = scalar_lea.vmem %s3358_s5, %s2216_s29  ;;  %s572_s21 = scalar_lea.vmem %s3360_s7, %s2790_s20  ;;  %654 = vst [vmem:[#allocation2 + $0x30] sm:$0xff] (!%p2219_p4), %v2577_v6  ;;  %655 = vst [vmem:[#allocation2 + $0x38] sm:$0xff] (!%p2219_p4), %v2578_v7 }
  0x19   : > { %s575_s26 = scalar_lea.vmem %s3361_s8, %s2790_s20  ;;  %s578_s13 = scalar_lea.vmem %s3362_s9, %s2790_s20 }
  0x1b PF: > { %v2579_v9 = vld [vmem:[%s2797_s25] sm:$0xff]   ;;  %v2580_v11 = vld [vmem:[%s2797_s25 + $0x8] sm:$0xff]   ;;  %v2581_v13 = vld [vmem:[%s2797_s25 + $0x10] sm:$0xff]   ;;  %v2695_v56 = vmov 0   ;;  %p2287_p5 = scmp.ge.s32.totalorder %s2784_s19, 1 }
  0x1c   : > { %v656_v8 = vld [vmem:[#allocation2] sm:$0xff]  ;;  %v657_v10 = vld [vmem:[#allocation2 + $0x8] sm:$0xff]  ;;  %2428 = vmatprep.subr.bf16.mxu1 %v2579_v9  ;;  %v2587_v17 = vld [vmem:[%s3353_s0] sm:$0xff]  }
  0x1d   : > { %2460 = vmatprep.subr.bf16.mxu0 %v656_v8  ;;  %2429 = vmatpush3.bf16.msra.mxu1 %v2579_v9  ;;  %v658_v12 = vld [vmem:[#allocation2 + $0x10] sm:$0xff]  ;;  %v659_v14 = vld [vmem:[#allocation2 + $0x18] sm:$0xff]  ;;  %v2582_v15 = vld [vmem:[%s2797_s25 + $0x18] sm:$0xff]  }
  0x1e   : > { %2461 = vmatpush3.bf16.msra.mxu0 %v656_v8  ;;  %2430 = vmatprep.subr.bf16.mxu1 %v2580_v11  ;;  %v660_v16 = vld [vmem:[#allocation2 + $0x20] sm:$0xff]  ;;  %v2583_v18 = vld [vmem:[%s2797_s25 + $0x20] sm:$0xff]   ;;  %v661_v20 = vld [vmem:[#allocation2 + $0x28] sm:$0xff] }
  0x1f   : > { %2462 = vmatprep.subr.bf16.mxu0 %v657_v10  ;;  %2476 = vmatprep.mubr.bf16.mxu0 %v2587_v17  ;;  %v2589_v19 = vld [vmem:[%s3354_s1] sm:$0xff]   ;;  %v2584_v21 = vld [vmem:[%s2797_s25 + $0x28] sm:$0xff]   ;;  %v2585_v23 = vld [vmem:[%s2797_s25 + $0x30] sm:$0xff]  }
  0x20   : > { %2444 = vmatprep.mubr.bf16.mxu1 %v2589_v19  ;;  %v662_v22 = vld [vmem:[#allocation2 + $0x30] sm:$0xff]  ;;  %v663_v24 = vld [vmem:[#allocation2 + $0x38] sm:$0xff]  ;;  %v2586_v25 = vld [vmem:[%s2797_s25 + $0x38] sm:$0xff]  }
  0x21   : > { %2431 = vmatpush3.bf16.msra.mxu1 %v2580_v11  ;;  %v2588_v26 = vld [vmem:[%s3353_s0 + $0x8] sm:$0xff]   ;;  %v2592_v28 = vld [vmem:[%s3353_s0 + $0x10] sm:$0xff]   ;;  %v2594_v34 = vld [vmem:[%s3353_s0 + $0x18] sm:$0xff]  }
  0x22   : > { %2463 = vmatpush3.bf16.msra.mxu0 %v657_v10  ;;  %2432 = vmatprep.subr.bf16.mxu1 %v2581_v13  ;;  %v2605_v27 = vld [vmem:[%s2802_s28 + $0x4] ss:$8 sps:$4 sm:$0xff]   ;;  %v2591_v30 = vld [vmem:[%s3354_s1 + $0x10] sm:$0xff]   ;;  %v2603_v31 = vld [vmem:[%s2802_s28] ss:$8 sps:$4 sm:$0xff]  }
  0x23   : > { %2464 = vmatprep.subr.bf16.mxu0 %v658_v12  ;;  %v2590_v29 = vld [vmem:[%s3354_s1 + $0x8] sm:$0xff]   ;;  %v2608_v32 = vld [vmem:[%s2802_s28 + $0x14] ss:$8 sps:$4 sm:$0xff]   ;;  %v2606_v33 = vld [vmem:[%s2802_s28 + $0x10] ss:$8 sps:$4 sm:$0xff]  }
  0x24   : > { %v2611_v35 = vld [vmem:[%s2802_s28 + $0x24] ss:$8 sps:$4 sm:$0xff]   ;;  %v2593_v37 = vld [vmem:[%s3354_s1 + $0x18] sm:$0xff]   ;;  %v2609_v39 = vld [vmem:[%s2802_s28 + $0x20] ss:$8 sps:$4 sm:$0xff]  }
  0x25   : > { %2433 = vmatpush3.bf16.msra.mxu1 %v2581_v13  ;;  %v2596_v36 = vld [vmem:[%s3353_s0 + $0x20] sm:$0xff]   ;;  %v2614_v40 = vld [vmem:[%s2802_s28 + $0x34] ss:$8 sps:$4 sm:$0xff]   ;;  %v2612_v41 = vld [vmem:[%s2802_s28 + $0x30] ss:$8 sps:$4 sm:$0xff]  }
  0x26   : > { %2465 = vmatpush3.bf16.msra.mxu0 %v658_v12  ;;  %2434 = vmatprep.subr.bf16.mxu1 %v2582_v15  ;;  %v2595_v38 = vld [vmem:[%s3354_s1 + $0x20] sm:$0xff]   ;;  %v2598_v42 = vld [vmem:[%s3353_s0 + $0x28] sm:$0xff]   ;;  %v2600_v44 = vld [vmem:[%s3353_s0 + $0x30] sm:$0xff]  }
  0x27   : > { %2466 = vmatprep.subr.bf16.mxu0 %v659_v14  ;;  %v2617_v43 = vld [vmem:[%s2802_s28 + $0x44] ss:$8 sps:$4 sm:$0xff]   ;;  %v2599_v46 = vld [vmem:[%s3354_s1 + $0x30] sm:$0xff]   ;;  %v2615_v47 = vld [vmem:[%s2802_s28 + $0x40] ss:$8 sps:$4 sm:$0xff]  }
  0x28   : > { %v2597_v45 = vld [vmem:[%s3354_s1 + $0x28] sm:$0xff]   ;;  %v2620_v48 = vld [vmem:[%s2802_s28 + $0x54] ss:$8 sps:$4 sm:$0xff]   ;;  %v2618_v49 = vld [vmem:[%s2802_s28 + $0x50] ss:$8 sps:$4 sm:$0xff]  }
  0x29   : > { %2435 = vmatpush3.bf16.msra.mxu1 %v2582_v15  ;;  %v2602_v50 = vld [vmem:[%s3353_s0 + $0x38] sm:$0xff]   ;;  %v2623_v52 = vld [vmem:[%s2802_s28 + $0x64] ss:$8 sps:$4 sm:$0xff]   ;;  %v2621_v53 = vld [vmem:[%s2802_s28 + $0x60] ss:$8 sps:$4 sm:$0xff]  }
  0x2a   : > { %2467 = vmatpush3.bf16.msra.mxu0 %v659_v14  ;;  %2436 = vmatprep.subr.bf16.mxu1 %v2583_v18  ;;  %v2601_v51 = vld [vmem:[%s3354_s1 + $0x38] sm:$0xff]   ;;  %v2627_v57 = vld [vmem:[%s2808_s17 + $0x40] sm:$0xff]   ;;  %v2629_v59 = vld [vmem:[%s2808_s17 + $0x48] sm:$0xff]  }
  0x2b   : > { %2468 = vmatprep.subr.bf16.mxu0 %v660_v16  ;;  %v2626_v54 = vld [vmem:[%s2802_s28 + $0x74] ss:$8 sps:$4 sm:$0xff]   ;;  %v2624_v55 = vld [vmem:[%s2802_s28 + $0x70] ss:$8 sps:$4 sm:$0xff]   ;;  %v2628_v58 = vld [vmem:[%s2808_s17] sm:$0xff]  }
  0x2c   : > { %v2630_v60 = vld [vmem:[%s2808_s17 + $0x8] sm:$0xff]   ;;  %v2631_v61 = vld [vmem:[%s2808_s17 + $0x50] sm:$0xff]   ;;  %v2633_v63 = vld [vmem:[%s2808_s17 + $0x58] sm:$0xff]  }
  0x2d   : > { %2437 = vmatpush3.bf16.msra.mxu1 %v2583_v18  ;;  %v2632_v62 = vld [vmem:[%s2808_s17 + $0x10] sm:$0xff]   ;;  %v2634_v0 = vld [vmem:[%s2808_s17 + $0x18] sm:$0xff]   ;;  %v2635_v1 = vld [vmem:[%s2808_s17 + $0x60] sm:$0xff]  }
  0x2e   : > { %2469 = vmatpush3.bf16.msra.mxu0 %v660_v16  ;;  %2438 = vmatprep.subr.bf16.mxu1 %v2584_v21  ;;  %v2636_v2 = vld [vmem:[%s2808_s17 + $0x20] sm:$0xff]   ;;  %v2637_v3 = vld [vmem:[%s2808_s17 + $0x68] sm:$0xff]  }
  0x2f   : > { %2470 = vmatprep.subr.bf16.mxu0 %v661_v20  ;;  %v2638_v4 = vld [vmem:[%s2808_s17 + $0x28] sm:$0xff]  }
  0x31   : > { %2439 = vmatpush3.bf16.msra.mxu1 %v2584_v21 }
  0x32   : > { %2471 = vmatpush3.bf16.msra.mxu0 %v661_v20  ;;  %2440 = vmatprep.subr.bf16.mxu1 %v2585_v23 }
  0x33   : > { %2472 = vmatprep.subr.bf16.mxu0 %v662_v22 }
  0x35   : > { %2441 = vmatpush3.bf16.msra.mxu1 %v2585_v23 }
  0x36   : > { %2473 = vmatpush3.bf16.msra.mxu0 %v662_v22  ;;  %2442 = vmatprep.subr.bf16.mxu1 %v2586_v25 }
  0x37   : > { %2474 = vmatprep.subr.bf16.mxu0 %v663_v24 }
  0x39   : > { %2443 = vmatpush3.bf16.msra.mxu1 %v2586_v25 }
  0x3a   : > { %2475 = vmatpush3.bf16.msra.mxu0 %v663_v24  ;;  %1166 = vmatprep.subr.bf16.mxu1 %v2605_v27 }
  0x3b   : > { %2341 = vmatprep.subr.bf16.mxu0 %v2627_v57 }
  0x3c   : > { %2445 = vmatmul.mubr.bf16.vlgmr.msra.gmra.mrb[0].mxu1 %v2590_v29 }
  0x3d   : > { %2477 = vmatmul.mubr.bf16.vlgmr.msra.gmra.mrb[0].mxu0 %v2588_v26  ;;  %2448 = vmatprep.mubr.bf16.mxu1 %v2591_v30 }
  0x3e   : > { %2480 = vmatprep.mubr.bf16.mxu0 %v2592_v28  ;;  %1167 = vmatpush1.bf16.msra.mxu1 %v2603_v31 }
  0x3f   : > { %1168 = vmatprep.subr.bf16.mxu1 %v2608_v32  ;;  %2342 = vmatpush3.bf16.msra.mxu0 %v2628_v58 }
  0x40   : > { %2343 = vmatprep.subr.bf16.mxu0 %v2629_v59 }
  0x42   : > { %1169 = vmatpush1.bf16.msra.mxu1 %v2606_v33 }
  0x43   : > { %1170 = vmatprep.subr.bf16.mxu1 %v2611_v35  ;;  %2344 = vmatpush3.bf16.msra.mxu0 %v2630_v60 }
  0x44   : > { %2449 = vmatmul.mubr.bf16.gmra.mrb[4].mxu1 %v2593_v37  ;;  %2345 = vmatprep.subr.bf16.mxu0 %v2631_v61 }
  0x45   : > { %2481 = vmatmul.mubr.bf16.gmra.mrb[4].mxu0 %v2594_v34  ;;  %2452 = vmatprep.mubr.bf16.mxu1 %v2595_v38 }
  0x46   : > { %2484 = vmatprep.mubr.bf16.mxu0 %v2596_v36  ;;  %1171 = vmatpush1.bf16.msra.mxu1 %v2609_v39 }
  0x47   : > { %1172 = vmatprep.subr.bf16.mxu1 %v2614_v40  ;;  %2346 = vmatpush3.bf16.msra.mxu0 %v2632_v62  ;;  %v2639_v62 = vld [vmem:[%s2808_s17 + $0x70] sm:$0xff]  }
  0x48   : > { %2347 = vmatprep.subr.bf16.mxu0 %v2633_v63  ;;  %v2640_v63 = vld [vmem:[%s2808_s17 + $0x30] sm:$0xff]  }
  0x4a   : > { %1173 = vmatpush1.bf16.msra.mxu1 %v2612_v41 }
  0x4b   : > { %1174 = vmatprep.subr.bf16.mxu1 %v2617_v43  ;;  %2348 = vmatpush3.bf16.msra.mxu0 %v2634_v0  ;;  %v2641_v0 = vld [vmem:[%s2808_s17 + $0x78] sm:$0xff]  }
  0x4c   : > { %2453 = vmatmul.mubr.bf16.gmra.mrb[8].mxu1 %v2597_v45  ;;  %2349 = vmatprep.subr.bf16.mxu0 %v2635_v1  ;;  %v2642_v1 = vld [vmem:[%s2808_s17 + $0x38] sm:$0xff]  }
  0x4d   : > { %2485 = vmatmul.mubr.bf16.gmra.mrb[8].mxu0 %v2598_v42  ;;  %2456 = vmatprep.mubr.bf16.mxu1 %v2599_v46 }
  0x4e   : > { %2488 = vmatprep.mubr.bf16.mxu0 %v2600_v44  ;;  %1175 = vmatpush1.bf16.msra.mxu1 %v2615_v47 }
  0x4f   : > { %1176 = vmatprep.subr.bf16.mxu1 %v2620_v48  ;;  %2350 = vmatpush3.bf16.msra.mxu0 %v2636_v2  ;;  %v1076_v2 = vlaneseq }
  0x50   : > { %2351 = vmatprep.subr.bf16.mxu0 %v2637_v3 }
  0x51   : > { %v1077_v3 = vshrl.u32 %v1076_v2, 7 }
  0x52   : > { %1177 = vmatpush1.bf16.msra.mxu1 %v2618_v49 }
  0x53   : > { %1178 = vmatprep.subr.bf16.mxu1 %v2623_v52  ;;  %2352 = vmatpush3.bf16.msra.mxu0 %v2638_v4  ;;  %v1078_v4 = vsub.s32 0, %v1077_v3 }
  0x54   : > { %2457 = vmatmul.mubr.bf16.gmra.mrb[12].mxu1 %v2601_v51  ;;  %2353 = vmatprep.subr.bf16.mxu0 %v2639_v62 }
  0x55   : > { %2489 = vmatmul.mubr.bf16.gmra.mrb[12].mxu0 %v2602_v50  ;;  %1198 = vmatprep.mubr.bf16.mxu1 %v2695_v56 }
  0x56   : > { %1179 = vmatpush1.bf16.msra.mxu1 %v2621_v53 }
  0x57   : > { %1180 = vmatprep.subr.bf16.mxu1 %v2626_v54  ;;  %2354 = vmatpush3.bf16.msra.mxu0 %v2640_v63 }
  0x58   : > { %2355 = vmatprep.subr.bf16.mxu0 %v2641_v0 }
  0x5a   : > { %1181 = vmatpush1.bf16.msra.mxu1 %v2624_v55 }
  0x5b   : > { %2356 = vmatpush3.bf16.msra.mxu0 %v2642_v1 }
 0x10f   : > { %v2446_v7 = vpop.f32.mrb[0].mxu1 }
 0x110   : > { %v2478_v5 = vpop.f32.mrb[0].mxu0  ;;  %v842_v10 = vpop.f32.mrb[1].mxu1 }
 0x111   : > { %v987_v6 = vpop.f32.mrb[1].mxu0  ;;  %v996_v9 = vadd.f32 %v2478_v5, %v2446_v7  ;;  %v2447_v13 = vpop.f32.mrb[2].mxu1  ;;  %v1074_v5 = vld [vmem:[%s2813_s14] sm:$0x3] }
 0x112   : > { %v2479_v8 = vpop.f32.mrb[2].mxu0  ;;  %v988_v12 = vadd.f32 %v987_v6, %v842_v10  ;;  %v845_v15 = vpop.f32.mrb[3].mxu1  ;;  %v1082_v6 = vsub.s32 1, %v1077_v3  ;;  %v2949_v7 = vrot.slane %v1074_v5, %v1078_v4 }
 0x113   : > { %v990_v11 = vpop.f32.mrb[3].mxu0  ;;  %v999_v14 = vadd.f32 %v2479_v8, %v2447_v13 }
 0x114   : > { %v991_v16 = vadd.f32 %v990_v11, %v845_v15  ;;  %v2951_v8 = vrot.slane %v1074_v5, %v1082_v6 }
 0x115   : > { %v1051_v17 = vpack.c.bf16 %v999_v14, %v996_v9 }
 0x116   : > { %v1050_v18 = vpack.c.bf16 %v991_v16, %v988_v12 }
 0x117   : > { %v2450_v21 = vpop.f32.mrb[4].mxu1 }
 0x118   : > { %v2482_v19 = vpop.f32.mrb[4].mxu0  ;;  %1199 = vmatmul.mubr.bf16.vlgmr.msra.gmra.mrb[16].mxu1 %v1050_v18  ;;  %v858_v24 = vpop.f32.mrb[5].mxu1 }
 0x119   : > { %v1003_v20 = vpop.f32.mrb[5].mxu0  ;;  %v1012_v23 = vadd.f32 %v2482_v19, %v2450_v21  ;;  %1208 = vmatprep.mubr.bf16.mxu1 %v2695_v56  ;;  %v2451_v27 = vpop.f32.mrb[6].mxu1 }
 0x11a   : > { %v2483_v22 = vpop.f32.mrb[6].mxu0  ;;  %v1004_v26 = vadd.f32 %v1003_v20, %v858_v24  ;;  %v861_v29 = vpop.f32.mrb[7].mxu1 }
 0x11b   : > { %v1006_v25 = vpop.f32.mrb[7].mxu0  ;;  %v1015_v28 = vadd.f32 %v2483_v22, %v2451_v27 }
 0x11c   : > { %v1007_v30 = vadd.f32 %v1006_v25, %v861_v29 }
 0x11d   : > { %v1053_v31 = vpack.c.bf16 %v1015_v28, %v1012_v23 }
 0x11e   : > { %v1052_v32 = vpack.c.bf16 %v1007_v30, %v1004_v26 }
 0x11f   : > { %v2454_v35 = vpop.f32.mrb[8].mxu1 }
 0x120   : > { %v2486_v33 = vpop.f32.mrb[8].mxu0  ;;  %1209 = vmatmul.mubr.bf16.gmra.mrb[20].mxu1 %v1051_v17  ;;  %v874_v38 = vpop.f32.mrb[9].mxu1 }
 0x121   : > { %v1019_v34 = vpop.f32.mrb[9].mxu0  ;;  %1218 = vmatprep.mubr.bf16.mxu1 %v2695_v56  ;;  %v1028_v37 = vadd.f32 %v2486_v33, %v2454_v35  ;;  %v2455_v41 = vpop.f32.mrb[10].mxu1 }
 0x122   : > { %v2487_v36 = vpop.f32.mrb[10].mxu0  ;;  %v1020_v40 = vadd.f32 %v1019_v34, %v874_v38  ;;  %v877_v43 = vpop.f32.mrb[11].mxu1 }
 0x123   : > { %v1022_v39 = vpop.f32.mrb[11].mxu0  ;;  %v1031_v42 = vadd.f32 %v2487_v36, %v2455_v41 }
 0x124   : > { %v1023_v44 = vadd.f32 %v1022_v39, %v877_v43 }
 0x125   : > { %v1055_v45 = vpack.c.bf16 %v1031_v42, %v1028_v37 }
 0x126   : > { %v1054_v46 = vpack.c.bf16 %v1023_v44, %v1020_v40 }
 0x127   : > { %v2458_v49 = vpop.f32.mrb[12].mxu1 }
 0x128   : > { %v2490_v47 = vpop.f32.mrb[12].mxu0  ;;  %1219 = vmatmul.mubr.bf16.gmra.mrb[24].mxu1 %v1052_v32  ;;  %v890_v52 = vpop.f32.mrb[13].mxu1 }
 0x129   : > { %v1035_v48 = vpop.f32.mrb[13].mxu0  ;;  %1228 = vmatprep.mubr.bf16.mxu1 %v2695_v56  ;;  %v1044_v51 = vadd.f32 %v2490_v47, %v2458_v49  ;;  %v2459_v55 = vpop.f32.mrb[14].mxu1 }
 0x12a   : > { %v2491_v50 = vpop.f32.mrb[14].mxu0  ;;  %v1036_v54 = vadd.f32 %v1035_v48, %v890_v52  ;;  %v893_v58 = vpop.f32.mrb[15].mxu1 }
 0x12b   : > { %v1038_v53 = vpop.f32.mrb[15].mxu0  ;;  %v1047_v57 = vadd.f32 %v2491_v50, %v2459_v55 }
 0x12c   : > { %v1039_v59 = vadd.f32 %v1038_v53, %v893_v58 }
 0x12d   : > { %v1057_v60 = vpack.c.bf16 %v1047_v57, %v1044_v51 }
 0x12e   : > { %v1056_v61 = vpack.c.bf16 %v1039_v59, %v1036_v54 }
 0x130   : > { %1229 = vmatmul.mubr.bf16.gmra.mrb[28].mxu1 %v1053_v31 }
 0x131   : > { %1238 = vmatprep.mubr.bf16.mxu1 %v2695_v56 }
 0x138   : > { %1239 = vmatmul.mubr.bf16.gmra.mrb[32].mxu1 %v1054_v46 }
 0x139   : > { %1248 = vmatprep.mubr.bf16.mxu1 %v2695_v56 }
 0x140   : > { %1249 = vmatmul.mubr.bf16.gmra.mrb[36].mxu1 %v1055_v45 }
 0x141   : > { %1258 = vmatprep.mubr.bf16.mxu1 %v2695_v56 }
 0x148   : > { %1259 = vmatmul.mubr.bf16.gmra.mrb[40].mxu1 %v1056_v61 }
 0x149   : > { %1268 = vmatprep.mubr.bf16.mxu1 %v2695_v56 }
 0x150   : > { %1269 = vmatmul.mubr.bf16.gmra.mrb[44].mxu1 %v1057_v60 }
 0x1eb   : > { %v1200_v9 = vpop.f32.mrb[16].mxu1 }
 0x1ec   : > { %v1201_v56 = vadd.f32 %v1200_v9, %v2949_v7  ;;  %v1202_v10 = vpop.f32.mrb[17].mxu1 }
 0x1ed   : > { %v1203_v11 = vadd.f32 %v1202_v10, %v2951_v8  ;;  %v1204_v12 = vpop.f32.mrb[18].mxu1 }
 0x1ee   : > { %v1205_v13 = vadd.f32 %v1204_v12, %v2949_v7  ;;  %v1206_v14 = vpop.f32.mrb[19].mxu1  ;;  %v1279_v16 = vmax.f32 %v1201_v56, 0.0 }
 0x1ef   : > { %v1207_v15 = vadd.f32 %v1206_v14, %v2951_v8  ;;  %v1280_v18 = vmax.f32 %v1203_v11, 0.0 }
 0x1f0   : > { %v1281_v17 = vmax.f32 %v1205_v13, 0.0 }
 0x1f1   : > { %v1282_v19 = vmax.f32 %v1207_v15, 0.0 }
 0x1f2   : > { %v1311_v20 = vpack.c.bf16 %v1281_v17, %v1279_v16 }
 0x1f3   : > { %v1312_v21 = vpack.c.bf16 %v1282_v19, %v1280_v18  ;;  %v1210_v22 = vpop.f32.mrb[20].mxu1 }
 0x1f4   : > { %v1211_v23 = vadd.f32 %v1210_v22, %v2949_v7  ;;  %v1212_v24 = vpop.f32.mrb[21].mxu1 }
 0x1f5   : > { %v1213_v25 = vadd.f32 %v1212_v24, %v2951_v8  ;;  %v1214_v26 = vpop.f32.mrb[22].mxu1  ;;  %1494 = vmatprep.mubr.bf16.mxu0 %v1312_v21 }
 0x1f6   : > { %v1215_v27 = vadd.f32 %v1214_v26, %v2949_v7  ;;  %v1216_v28 = vpop.f32.mrb[23].mxu1  ;;  %1495 = vmatmul.mubr.bf16.vlgmr.msra.gmra.mrb[16].mxu0 %v1311_v20  ;;  %v1283_v30 = vmax.f32 %v1211_v23, 0.0 }
 0x1f7   : > { %v1217_v29 = vadd.f32 %v1216_v28, %v2951_v8  ;;  %v1284_v32 = vmax.f32 %v1213_v25, 0.0 }
 0x1f8   : > { %v1285_v31 = vmax.f32 %v1215_v27, 0.0 }
 0x1f9   : > { %v1286_v33 = vmax.f32 %v1217_v29, 0.0 }
 0x1fa   : > { %v1313_v34 = vpack.c.bf16 %v1285_v31, %v1283_v30 }
 0x1fb   : > { %v1314_v35 = vpack.c.bf16 %v1286_v33, %v1284_v32  ;;  %v1220_v36 = vpop.f32.mrb[24].mxu1 }
 0x1fc   : > { %v1221_v37 = vadd.f32 %v1220_v36, %v2949_v7  ;;  %v1222_v38 = vpop.f32.mrb[25].mxu1 }
 0x1fd   : > { %v1223_v39 = vadd.f32 %v1222_v38, %v2951_v8  ;;  %v1224_v40 = vpop.f32.mrb[26].mxu1  ;;  %1502 = vmatprep.mubr.bf16.mxu0 %v1314_v35 }
 0x1fe   : > { %v1225_v41 = vadd.f32 %v1224_v40, %v2949_v7  ;;  %v1226_v42 = vpop.f32.mrb[27].mxu1  ;;  %1503 = vmatmul.mubr.bf16.gmra.mrb[20].mxu0 %v1313_v34  ;;  %v1287_v44 = vmax.f32 %v1221_v37, 0.0 }
 0x1ff   : > { %v1227_v43 = vadd.f32 %v1226_v42, %v2951_v8  ;;  %v1288_v46 = vmax.f32 %v1223_v39, 0.0 }
 0x200   : > { %v1289_v45 = vmax.f32 %v1225_v41, 0.0 }
 0x201   : > { %v1290_v47 = vmax.f32 %v1227_v43, 0.0 }
 0x202   : > { %v1315_v48 = vpack.c.bf16 %v1289_v45, %v1287_v44 }
 0x203   : > { %v1316_v49 = vpack.c.bf16 %v1290_v47, %v1288_v46  ;;  %v1230_v50 = vpop.f32.mrb[28].mxu1 }
 0x204   : > { %v1231_v51 = vadd.f32 %v1230_v50, %v2949_v7  ;;  %v1232_v52 = vpop.f32.mrb[29].mxu1 }
 0x205   : > { %v1233_v53 = vadd.f32 %v1232_v52, %v2951_v8  ;;  %v1234_v54 = vpop.f32.mrb[30].mxu1  ;;  %1510 = vmatprep.mubr.bf16.mxu0 %v1316_v49 }
 0x206   : > { %v1235_v55 = vadd.f32 %v1234_v54, %v2949_v7  ;;  %v1236_v57 = vpop.f32.mrb[31].mxu1  ;;  %1511 = vmatmul.mubr.bf16.gmra.mrb[24].mxu0 %v1315_v48  ;;  %v1291_v59 = vmax.f32 %v1231_v51, 0.0 }
 0x207   : > { %v1237_v58 = vadd.f32 %v1236_v57, %v2951_v8  ;;  %v1292_v61 = vmax.f32 %v1233_v53, 0.0 }
 0x208   : > { %v1293_v60 = vmax.f32 %v1235_v55, 0.0 }
 0x209   : > { %v1294_v62 = vmax.f32 %v1237_v58, 0.0 }
 0x20a   : > { %v1317_v63 = vpack.c.bf16 %v1293_v60, %v1291_v59  ;;  %v2990_v60 = vld [vmem:[%s572_s21] ss:$0 sm:$0xff] }
 0x20b   : > { %v1318_v0 = vpack.c.bf16 %v1294_v62, %v1292_v61  ;;  %v1240_v1 = vpop.f32.mrb[32].mxu1 }
 0x20c   : > { %v1241_v2 = vadd.f32 %v1240_v1, %v2949_v7  ;;  %v1242_v3 = vpop.f32.mrb[33].mxu1 }
 0x20d   : > { %v1243_v4 = vadd.f32 %v1242_v3, %v2951_v8  ;;  %v1244_v5 = vpop.f32.mrb[34].mxu1  ;;  %1518 = vmatprep.mubr.bf16.mxu0 %v1318_v0 }
 0x20e   : > { %v1245_v6 = vadd.f32 %v1244_v5, %v2949_v7  ;;  %v1246_v9 = vpop.f32.mrb[35].mxu1  ;;  %1519 = vmatmul.mubr.bf16.gmra.mrb[28].mxu0 %v1317_v63  ;;  %v1295_v10 = vmax.f32 %v1241_v2, 0.0 }
 0x20f   : > { %v1247_v56 = vadd.f32 %v1246_v9, %v2951_v8  ;;  %v1296_v12 = vmax.f32 %v1243_v4, 0.0 }
 0x210   : > { %v1297_v11 = vmax.f32 %v1245_v6, 0.0 }
 0x211   : > { %v1298_v13 = vmax.f32 %v1247_v56, 0.0 }
 0x212   : > { %v1319_v14 = vpack.c.bf16 %v1297_v11, %v1295_v10 }
 0x213   : > { %v1320_v15 = vpack.c.bf16 %v1298_v13, %v1296_v12  ;;  %v1250_v16 = vpop.f32.mrb[36].mxu1 }
 0x214   : > { %v1251_v17 = vadd.f32 %v1250_v16, %v2949_v7  ;;  %v1252_v18 = vpop.f32.mrb[37].mxu1 }
 0x215   : > { %v1253_v19 = vadd.f32 %v1252_v18, %v2951_v8  ;;  %v1254_v20 = vpop.f32.mrb[38].mxu1  ;;  %1526 = vmatprep.mubr.bf16.mxu0 %v1320_v15 }
 0x216   : > { %v1255_v21 = vadd.f32 %v1254_v20, %v2949_v7  ;;  %v1256_v22 = vpop.f32.mrb[39].mxu1  ;;  %1527 = vmatmul.mubr.bf16.gmra.mrb[32].mxu0 %v1319_v14  ;;  %v1299_v24 = vmax.f32 %v1251_v17, 0.0 }
 0x217   : > { %v1257_v23 = vadd.f32 %v1256_v22, %v2951_v8  ;;  %v1300_v26 = vmax.f32 %v1253_v19, 0.0 }
 0x218   : > { %v1301_v25 = vmax.f32 %v1255_v21, 0.0 }
 0x219   : > { %v1302_v27 = vmax.f32 %v1257_v23, 0.0 }
 0x21a   : > { %v1321_v28 = vpack.c.bf16 %v1301_v25, %v1299_v24 }
 0x21b   : > { %v1322_v29 = vpack.c.bf16 %v1302_v27, %v1300_v26  ;;  %v1260_v30 = vpop.f32.mrb[40].mxu1 }
 0x21c   : > { %v1261_v31 = vadd.f32 %v1260_v30, %v2949_v7  ;;  %v1262_v32 = vpop.f32.mrb[41].mxu1 }
 0x21d   : > { %v1263_v33 = vadd.f32 %v1262_v32, %v2951_v8  ;;  %v1264_v34 = vpop.f32.mrb[42].mxu1  ;;  %1534 = vmatprep.mubr.bf16.mxu0 %v1322_v29 }
 0x21e   : > { %v1265_v35 = vadd.f32 %v1264_v34, %v2949_v7  ;;  %v1266_v36 = vpop.f32.mrb[43].mxu1  ;;  %1535 = vmatmul.mubr.bf16.gmra.mrb[36].mxu0 %v1321_v28  ;;  %v1303_v38 = vmax.f32 %v1261_v31, 0.0 }
 0x21f   : > { %v1267_v37 = vadd.f32 %v1266_v36, %v2951_v8  ;;  %v1304_v40 = vmax.f32 %v1263_v33, 0.0 }
 0x220   : > { %v1305_v39 = vmax.f32 %v1265_v35, 0.0 }
 0x221   : > { %v1306_v41 = vmax.f32 %v1267_v37, 0.0 }
 0x222   : > { %v1323_v42 = vpack.c.bf16 %v1305_v39, %v1303_v38 }
 0x223   : > { %v1324_v43 = vpack.c.bf16 %v1306_v41, %v1304_v40  ;;  %v1270_v44 = vpop.f32.mrb[44].mxu1 }
 0x224   : > { %v1271_v45 = vadd.f32 %v1270_v44, %v2949_v7  ;;  %v1272_v46 = vpop.f32.mrb[45].mxu1 }
 0x225   : > { %v1273_v47 = vadd.f32 %v1272_v46, %v2951_v8  ;;  %v1274_v48 = vpop.f32.mrb[46].mxu1  ;;  %1542 = vmatprep.mubr.bf16.mxu0 %v1324_v43 }
 0x226   : > { %v1275_v49 = vadd.f32 %v1274_v48, %v2949_v7  ;;  %v1276_v50 = vpop.f32.mrb[47].mxu1  ;;  %1543 = vmatmul.mubr.bf16.gmra.mrb[40].mxu0 %v1323_v42  ;;  %v1307_v52 = vmax.f32 %v1271_v45, 0.0 }
 0x227   : > { %v1277_v51 = vadd.f32 %v1276_v50, %v2951_v8  ;;  %v1308_v54 = vmax.f32 %v1273_v47, 0.0 }
 0x228   : > { %v1309_v53 = vmax.f32 %v1275_v49, 0.0 }
 0x229   : > { %v1310_v55 = vmax.f32 %v1277_v51, 0.0 }
 0x22a   : > { %v1325_v57 = vpack.c.bf16 %v1309_v53, %v1307_v52 }
 0x22b   : > { %v1326_v58 = vpack.c.bf16 %v1310_v55, %v1308_v54 }
 0x22d   : > { %1550 = vmatprep.mubr.bf16.mxu0 %v1326_v58 }
 0x22e   : > { %1551 = vmatmul.mubr.bf16.gmra.mrb[44].mxu0 %v1325_v57 }
 0x2c9   : > { %v2357_v59 = vpop.f32.mrb[16].mxu0 }
 0x2ca   : > { %v2358_v7 = vpop.f32.mrb[17].mxu0 }
 0x2cb   : > { %v2359_v61 = vadd.f32 %v2358_v7, %v2357_v59  ;;  %v2360_v62 = vpop.f32.mrb[18].mxu0 }
 0x2cc   : > { %v2361_v63 = vpop.f32.mrb[19].mxu0 }
 0x2cd   : > { %v2993_v8 = vadd.f32 %v2359_v61, %v2990_v60  ;;  %v2362_v0 = vadd.f32 %v2361_v63, %v2360_v62 }
 0x2cf   : > { %v2996_v1 = vadd.f32 %v2362_v0, %v2990_v60  ;;  %1559 = vadd.xlane.f32.xlu0 %v2993_v8  ;;  %v1608_v11 = vmul.f32 %v2993_v8, %v2993_v8 }
 0x2d1   : > { %v2363_v2 = vpop.f32.mrb[20].mxu0  ;;  %v1609_v3 = vmul.f32 %v2996_v1, %v2996_v1 }
 0x2d2   : > { %v2364_v4 = vpop.f32.mrb[21].mxu0 }
 0x2d3   : > { %v2365_v5 = vadd.f32 %v2364_v4, %v2363_v2  ;;  %v2366_v6 = vpop.f32.mrb[22].mxu0  ;;  %1626 = vadd.xlane.f32.xlu1 %v1609_v3  ;;  %1561 = vadd.xlane.f32.xlu0 %v2996_v1 }
 0x2d4   : > { %v2367_v9 = vpop.f32.mrb[23].mxu0 }
 0x2d5   : > { %v3003_v56 = vadd.f32 %v2365_v5, %v2990_v60  ;;  %v2368_v10 = vadd.f32 %v2367_v9, %v2366_v6 }
 0x2d7   : > { %1563 = vadd.xlane.f32.xlu1 %v3003_v56  ;;  %1624 = vadd.xlane.f32.xlu0 %v1608_v11  ;;  %v3009_v12 = vadd.f32 %v2368_v10, %v2990_v60  ;;  %v1610_v14 = vmul.f32 %v3003_v56, %v3003_v56 }
 0x2d9   : > { %v2369_v13 = vpop.f32.mrb[24].mxu0  ;;  %v1611_v21 = vmul.f32 %v3009_v12, %v3009_v12 }
 0x2da   : > { %v2370_v15 = vpop.f32.mrb[25].mxu0 }
 0x2db   : > { %v2371_v16 = vadd.f32 %v2370_v15, %v2369_v13  ;;  %v2372_v17 = vpop.f32.mrb[26].mxu0  ;;  %1565 = vadd.xlane.f32.xlu1 %v3009_v12  ;;  %1628 = vadd.xlane.f32.xlu0 %v1610_v14 }
 0x2dc   : > { %v2373_v18 = vpop.f32.mrb[27].mxu0 }
 0x2dd   : > { %v3015_v19 = vadd.f32 %v2371_v16, %v2990_v60  ;;  %v2374_v20 = vadd.f32 %v2373_v18, %v2372_v17 }
 0x2df   : > { %1630 = vadd.xlane.f32.xlu1 %v1611_v21  ;;  %1567 = vadd.xlane.f32.xlu0 %v3015_v19  ;;  %v3021_v22 = vadd.f32 %v2374_v20, %v2990_v60  ;;  %v1612_v24 = vmul.f32 %v3015_v19, %v3015_v19 }
 0x2e1   : > { %v2375_v23 = vpop.f32.mrb[28].mxu0  ;;  %v1613_v31 = vmul.f32 %v3021_v22, %v3021_v22 }
 0x2e2   : > { %v2376_v25 = vpop.f32.mrb[29].mxu0 }
 0x2e3   : > { %v2377_v26 = vadd.f32 %v2376_v25, %v2375_v23  ;;  %v2378_v27 = vpop.f32.mrb[30].mxu0  ;;  %1569 = vadd.xlane.f32.xlu1 %v3021_v22  ;;  %1632 = vadd.xlane.f32.xlu0 %v1612_v24 }
 0x2e4   : > { %v2379_v28 = vpop.f32.mrb[31].mxu0 }
 0x2e5   : > { %v3027_v29 = vadd.f32 %v2377_v26, %v2990_v60  ;;  %v2380_v30 = vadd.f32 %v2379_v28, %v2378_v27 }
 0x2e7   : > { %1634 = vadd.xlane.f32.xlu1 %v1613_v31  ;;  %1571 = vadd.xlane.f32.xlu0 %v3027_v29  ;;  %v3033_v32 = vadd.f32 %v2380_v30, %v2990_v60  ;;  %v1614_v34 = vmul.f32 %v3027_v29, %v3027_v29 }
 0x2e9   : > { %v2381_v33 = vpop.f32.mrb[32].mxu0  ;;  %v1615_v41 = vmul.f32 %v3033_v32, %v3033_v32 }
 0x2ea   : > { %v2382_v35 = vpop.f32.mrb[33].mxu0 }
 0x2eb   : > { %v2383_v36 = vadd.f32 %v2382_v35, %v2381_v33  ;;  %v2384_v37 = vpop.f32.mrb[34].mxu0  ;;  %1573 = vadd.xlane.f32.xlu1 %v3033_v32  ;;  %1636 = vadd.xlane.f32.xlu0 %v1614_v34 }
 0x2ec   : > { %v2385_v38 = vpop.f32.mrb[35].mxu0 }
 0x2ed   : > { %v3039_v39 = vadd.f32 %v2383_v36, %v2990_v60  ;;  %v2386_v40 = vadd.f32 %v2385_v38, %v2384_v37 }
 0x2ef   : > { %1638 = vadd.xlane.f32.xlu1 %v1615_v41  ;;  %1575 = vadd.xlane.f32.xlu0 %v3039_v39  ;;  %v3045_v42 = vadd.f32 %v2386_v40, %v2990_v60  ;;  %v1616_v44 = vmul.f32 %v3039_v39, %v3039_v39 }
 0x2f1   : > { %v2387_v43 = vpop.f32.mrb[36].mxu0  ;;  %v1617_v51 = vmul.f32 %v3045_v42, %v3045_v42 }
 0x2f2   : > { %v2388_v45 = vpop.f32.mrb[37].mxu0 }
 0x2f3   : > { %v2389_v46 = vadd.f32 %v2388_v45, %v2387_v43  ;;  %v2390_v47 = vpop.f32.mrb[38].mxu0  ;;  %1577 = vadd.xlane.f32.xlu1 %v3045_v42  ;;  %1640 = vadd.xlane.f32.xlu0 %v1616_v44 }
 0x2f4   : > { %v2391_v48 = vpop.f32.mrb[39].mxu0 }
 0x2f5   : > { %v3051_v49 = vadd.f32 %v2389_v46, %v2990_v60  ;;  %v2392_v50 = vadd.f32 %v2391_v48, %v2390_v47 }
 0x2f7   : > { %1642 = vadd.xlane.f32.xlu1 %v1617_v51  ;;  %1579 = vadd.xlane.f32.xlu0 %v3051_v49  ;;  %v3057_v52 = vadd.f32 %v2392_v50, %v2990_v60  ;;  %v1618_v54 = vmul.f32 %v3051_v49, %v3051_v49 }
 0x2f9   : > { %v2393_v53 = vpop.f32.mrb[40].mxu0  ;;  %v1619_v62 = vmul.f32 %v3057_v52, %v3057_v52 }
 0x2fa   : > { %v2394_v55 = vpop.f32.mrb[41].mxu0 }
 0x2fb   : > { %v2395_v57 = vadd.f32 %v2394_v55, %v2393_v53  ;;  %v2396_v58 = vpop.f32.mrb[42].mxu0  ;;  %1581 = vadd.xlane.f32.xlu1 %v3057_v52  ;;  %1644 = vadd.xlane.f32.xlu0 %v1618_v54 }
 0x2fc   : > { %v2397_v59 = vpop.f32.mrb[43].mxu0 }
 0x2fd   : > { %v3063_v7 = vadd.f32 %v2395_v57, %v2990_v60  ;;  %v2398_v61 = vadd.f32 %v2397_v59, %v2396_v58 }
 0x2ff   : > { %1646 = vadd.xlane.f32.xlu1 %v1619_v62  ;;  %1583 = vadd.xlane.f32.xlu0 %v3063_v7  ;;  %v3069_v63 = vadd.f32 %v2398_v61, %v2990_v60  ;;  %v1620_v2 = vmul.f32 %v3063_v7, %v3063_v7 }
 0x301   : > { %v2399_v0 = vpop.f32.mrb[44].mxu0  ;;  %v1621_v11 = vmul.f32 %v3069_v63, %v3069_v63 }
 0x302   : > { %v2400_v3 = vpop.f32.mrb[45].mxu0 }
 0x303   : > { %v2401_v4 = vadd.f32 %v2400_v3, %v2399_v0  ;;  %v2402_v5 = vpop.f32.mrb[46].mxu0  ;;  %1585 = vadd.xlane.f32.xlu1 %v3069_v63  ;;  %1648 = vadd.xlane.f32.xlu0 %v1620_v2 }
 0x304   : > { %v2403_v6 = vpop.f32.mrb[47].mxu0 }
 0x305   : > { %v3075_v9 = vadd.f32 %v2401_v4, %v2990_v60  ;;  %v2404_v10 = vadd.f32 %v2403_v6, %v2402_v5 }
 0x307   : > { %1650 = vadd.xlane.f32.xlu1 %v1621_v11  ;;  %1587 = vadd.xlane.f32.xlu0 %v3075_v9  ;;  %v3081_v13 = vadd.f32 %v2404_v10, %v2990_v60  ;;  %v1622_v14 = vmul.f32 %v3075_v9, %v3075_v9  ;;  %v3110_v11 = vld [vmem:[%s575_s26] ss:$0 sm:$0xff] }
 0x309   : > { %v1623_v15 = vmul.f32 %v3081_v13, %v3081_v13 }
 0x30b   : > { %1589 = vadd.xlane.f32.xlu1 %v3081_v13  ;;  %1652 = vadd.xlane.f32.xlu0 %v1622_v14 }
 0x30f   : > { %1654 = vadd.xlane.f32.xlu1 %v1623_v15 }
 0x35c   : > { %v1560_v16 = vpop.xlane.xlu0 %1559 }
 0x35d   : > { %v1592_v20 = vmul.f32 0.0078125, %v1560_v16 }
 0x35f   : > { %v1672_v26 = vmul.f32 %v1592_v20, %v1592_v20 }
 0x360   : > { %v1627_v17 = vpop.xlane.xlu1 %1626  ;;  %v1562_v18 = vpop.xlane.xlu0 %1561 }
 0x361   : > { %v1593_v21 = vmul.f32 0.0078125, %v1562_v18  ;;  %v1657_v23 = vmul.f32 0.0078125, %v1627_v17  ;;  %v1752_v17 = vsub.f32 %v2993_v8, %v1592_v20 }
 0x363   : > { %v1673_v24 = vmul.f32 %v1593_v21, %v1593_v21  ;;  %v1753_v3 = vsub.f32 %v2996_v1, %v1593_v21  ;;  %v3120_v21 = vld [vmem:[%s578_s13] ss:$0 sm:$0xff] }
 0x364   : > { %v1564_v25 = vpop.xlane.xlu1 %1563  ;;  %v1625_v60 = vpop.xlane.xlu0 %1624 }
 0x365   : > { %v1689_v27 = vsub.f32 %v1657_v23, %v1673_v24  ;;  %v1656_v28 = vmul.f32 0.0078125, %v1625_v60  ;;  %v3088_v30 = vmul.f32 0.0078125, %v1564_v25 }
 0x367   : > { %v1705_v31 = vmax.f32 %v1689_v27, 0.0  ;;  %v1688_v33 = vsub.f32 %v1656_v28, %v1672_v26  ;;  %v1674_v41 = vmul.f32 %v3088_v30, %v3088_v30 }
 0x368   : > { %v1566_v34 = vpop.xlane.xlu1 %1565  ;;  %v1629_v35 = vpop.xlane.xlu0 %1628 }
 0x369   : > { %v1721_v36 = vadd.f32 1e-05, %v1705_v31  ;;  %v1704_v37 = vmax.f32 %v1688_v33, 0.0  ;;  %v3090_v38 = vmul.f32 0.0078125, %v1566_v34  ;;  %v1658_v40 = vmul.f32 0.0078125, %v1629_v35 }
 0x36a   : > { %v1754_v35 = vsub.f32 %v3003_v56, %v3088_v30 }
 0x36b   : > { %2643 = vrsqrt.f32 %v1721_v36  ;;  %v1720_v43 = vadd.f32 1e-05, %v1704_v37  ;;  %v1690_v44 = vsub.f32 %v1658_v40, %v1674_v41  ;;  %v1675_v47 = vmul.f32 %v3090_v38, %v3090_v38 }
 0x36c   : > { %v1631_v45 = vpop.xlane.xlu1 %1630  ;;  %v1568_v46 = vpop.xlane.xlu0 %1567 }
 0x36d   : > { %2645 = vrsqrt.f32 %v1720_v43  ;;  %v1659_v48 = vmul.f32 0.0078125, %v1631_v45  ;;  %v3096_v50 = vmul.f32 0.0078125, %v1568_v46  ;;  %v1706_v51 = vmax.f32 %v1690_v44, 0.0 }
 0x36f   : > { %v1691_v53 = vsub.f32 %v1659_v48, %v1675_v47  ;;  %v1722_v54 = vadd.f32 1e-05, %v1706_v51  ;;  %v1676_v59 = vmul.f32 %v3096_v50, %v3096_v50  ;;  %v1755_v51 = vsub.f32 %v3009_v12, %v3090_v38 }
 0x370   : > { %v1570_v55 = vpop.xlane.xlu1 %1569  ;;  %v1633_v57 = vpop.xlane.xlu0 %1632  ;;  %v1756_v12 = vsub.f32 %v3015_v19, %v3096_v50 }
 0x371   : > { %v1707_v58 = vmax.f32 %v1691_v53, 0.0  ;;  %v3100_v61 = vmul.f32 0.0078125, %v1570_v55  ;;  %v1660_v62 = vmul.f32 0.0078125, %v1633_v57  ;;  %2647 = vrsqrt.f32 %v1722_v54 }
 0x373   : > { %v1723_v0 = vadd.f32 1e-05, %v1707_v58  ;;  %v1692_v2 = vsub.f32 %v1660_v62, %v1676_v59  ;;  %v1677_v4 = vmul.f32 %v3100_v61, %v3100_v61  ;;  %v1757_v19 = vsub.f32 %v3021_v22, %v3100_v61 }
 0x374   : > { %v1635_v5 = vpop.xlane.xlu1 %1634  ;;  %v1572_v6 = vpop.xlane.xlu0 %1571 }
 0x375   : > { %v2644_v10 = vpop.eup %2643  ;;  %2649 = vrsqrt.f32 %v1723_v0  ;;  %v1708_v14 = vmax.f32 %v1692_v2, 0.0  ;;  %v1661_v15 = vmul.f32 0.0078125, %v1635_v5  ;;  %v3112_v16 = vmul.f32 0.0078125, %v1572_v6 }
 0x376   : > { %v1769_v1 = vmul.f32 %v2644_v10, %v1753_v3 }
 0x377   : > { %v2646_v18 = vpop.eup %2645  ;;  %v1724_v23 = vadd.f32 1e-05, %v1708_v14  ;;  %v1693_v24 = vsub.f32 %v1661_v15, %v1677_v4  ;;  %v1678_v26 = vmul.f32 %v3112_v16, %v3112_v16  ;;  %v1758_v61 = vsub.f32 %v3027_v29, %v3112_v16 }
 0x378   : > { %v1792_v25 = vmul.f32 %v3110_v11, %v1769_v1  ;;  %v1768_v60 = vmul.f32 %v2646_v18, %v1752_v17  ;;  %v1574_v27 = vpop.xlane.xlu1 %1573  ;;  %v1637_v28 = vpop.xlane.xlu0 %1636 }
 0x379   : > { %2651 = vrsqrt.f32 %v1724_v23  ;;  %v1709_v8 = vmax.f32 %v1693_v24, 0.0  ;;  %v3125_v20 = vmul.f32 0.0078125, %v1574_v27  ;;  %v1662_v31 = vmul.f32 0.0078125, %v1637_v28 }
 0x37a   : > { %v3128_v33 = vadd.f32 %v3120_v21, %v1792_v25  ;;  %v1791_v34 = vmul.f32 %v3110_v11, %v1768_v60 }
 0x37b   : > { %v1725_v36 = vadd.f32 1e-05, %v1709_v8  ;;  %v1694_v37 = vsub.f32 %v1662_v31, %v1678_v26  ;;  %v2648_v40 = vpop.eup %2647  ;;  %v1679_v43 = vmul.f32 %v3125_v20, %v3125_v20  ;;  %v1759_v29 = vsub.f32 %v3033_v32, %v3125_v20 }
 0x37c   : > { %v3134_v41 = vadd.f32 %v3120_v21, %v1791_v34  ;;  %v1639_v44 = vpop.xlane.xlu1 %1638  ;;  %v1576_v45 = vpop.xlane.xlu0 %1575  ;;  %v1770_v46 = vmul.f32 %v2648_v40, %v1754_v35 }
 0x37d   : > { %2653 = vrsqrt.f32 %v1725_v36  ;;  %v1710_v47 = vmax.f32 %v1694_v37, 0.0  ;;  %v1663_v48 = vmul.f32 0.0078125, %v1639_v44  ;;  %v3140_v53 = vmul.f32 0.0078125, %v1576_v45 }
 0x37e   : > { %v1793_v30 = vmul.f32 %v3110_v11, %v1770_v46 }
 0x37f   : > { %v2650_v56 = vpop.eup %2649  ;;  %v1726_v54 = vadd.f32 1e-05, %v1710_v47  ;;  %v1695_v55 = vsub.f32 %v1663_v48, %v1679_v43  ;;  %v1680_v38 = vmul.f32 %v3140_v53, %v3140_v53  ;;  %v1760_v20 = vsub.f32 %v3039_v39, %v3140_v53 }
 0x380   : > { %v1771_v57 = vmul.f32 %v2650_v56, %v1755_v51  ;;  %v1578_v58 = vpop.xlane.xlu1 %1577  ;;  %v1641_v59 = vpop.xlane.xlu0 %1640  ;;  %v3144_v62 = vadd.f32 %v3120_v21, %v1793_v30 }
 0x381   : > { %2655 = vrsqrt.f32 %v1726_v54  ;;  %v1711_v0 = vmax.f32 %v1695_v55, 0.0  ;;  %v3146_v2 = vmul.f32 0.0078125, %v1578_v58  ;;  %v1664_v4 = vmul.f32 0.0078125, %v1641_v59 }
 0x382   : > { %v1794_v3 = vmul.f32 %v3110_v11, %v1771_v57 }
 0x383   : > { %v2652_v5 = vpop.eup %2651  ;;  %v1727_v6 = vadd.f32 1e-05, %v1711_v0  ;;  %v1696_v15 = vsub.f32 %v1664_v4, %v1680_v38  ;;  %v1681_v18 = vmul.f32 %v3146_v2, %v3146_v2 }
 0x384   : > { %v3154_v10 = vadd.f32 %v3120_v21, %v1794_v3  ;;  %v1772_v14 = vmul.f32 %v2652_v5, %v1756_v12  ;;  %v1643_v17 = vpop.xlane.xlu1 %1642  ;;  %v1580_v1 = vpop.xlane.xlu0 %1579 }
 0x385   : > { %2657 = vrsqrt.f32 %v1727_v6  ;;  %v1665_v23 = vmul.f32 0.0078125, %v1643_v17  ;;  %v3158_v24 = vmul.f32 0.0078125, %v1580_v1  ;;  %v1712_v25 = vmax.f32 %v1696_v15, 0.0 }
 0x386   : > { %v1795_v50 = vmul.f32 %v3110_v11, %v1772_v14 }
 0x387   : > { %v2654_v60 = vpop.eup %2653  ;;  %v1697_v26 = vsub.f32 %v1665_v23, %v1681_v18  ;;  %v1728_v8 = vadd.f32 1e-05, %v1712_v25  ;;  %v1682_v36 = vmul.f32 %v3158_v24, %v3158_v24 }
 0x388   : > { %v3164_v27 = vadd.f32 %v3120_v21, %v1795_v50  ;;  %v1773_v28 = vmul.f32 %v2654_v60, %v1757_v19  ;;  %v1582_v31 = vpop.xlane.xlu1 %1581  ;;  %v1645_v34 = vpop.xlane.xlu0 %1644 }
 0x389   : > { %v1713_v35 = vmax.f32 %v1697_v26, 0.0  ;;  %v3168_v37 = vmul.f32 0.0078125, %v1582_v31  ;;  %v1666_v40 = vmul.f32 0.0078125, %v1645_v34  ;;  %2659 = vrsqrt.f32 %v1728_v8 }
 0x38a   : > { %v1796_v22 = vmul.f32 %v3110_v11, %v1773_v28  ;;  %v1761_v28 = vsub.f32 %v3045_v42, %v3146_v2  ;;  %v1762_v42 = vsub.f32 %v3051_v49, %v3158_v24 }
 0x38b   : > { %v2656_v43 = vpop.eup %2655  ;;  %v1729_v44 = vadd.f32 1e-05, %v1713_v35  ;;  %v1698_v45 = vsub.f32 %v1666_v40, %v1682_v36  ;;  %v1683_v48 = vmul.f32 %v3168_v37, %v3168_v37 }
 0x38c   : > { %v3174_v46 = vadd.f32 %v3120_v21, %v1796_v22  ;;  %v1774_v47 = vmul.f32 %v2656_v43, %v1758_v61  ;;  %v1647_v51 = vpop.xlane.xlu1 %1646  ;;  %v1584_v56 = vpop.xlane.xlu0 %1583 }
 0x38d   : > { %2661 = vrsqrt.f32 %v1729_v44  ;;  %v1714_v30 = vmax.f32 %v1698_v45, 0.0  ;;  %v1667_v54 = vmul.f32 0.0078125, %v1647_v51  ;;  %v3178_v55 = vmul.f32 0.0078125, %v1584_v56 }
 0x38e   : > { %v1797_v16 = vmul.f32 %v3110_v11, %v1774_v47 }
 0x38f   : > { %v2658_v57 = vpop.eup %2657  ;;  %v1730_v58 = vadd.f32 1e-05, %v1714_v30  ;;  %v1699_v59 = vsub.f32 %v1667_v54, %v1683_v48  ;;  %v1684_v12 = vmul.f32 %v3178_v55, %v3178_v55 }
 0x390   : > { %v3184_v0 = vadd.f32 %v3120_v21, %v1797_v16  ;;  %v1775_v3 = vmul.f32 %v2658_v57, %v1759_v29  ;;  %v1586_v38 = vpop.xlane.xlu1 %1585  ;;  %v1649_v4 = vpop.xlane.xlu0 %1648  ;;  %v1763_v57 = vsub.f32 %v3057_v52, %v3168_v37 }
 0x391   : > { %2663 = vrsqrt.f32 %v1730_v58  ;;  %v1715_v5 = vmax.f32 %v1699_v59, 0.0  ;;  %v3188_v6 = vmul.f32 0.0078125, %v1586_v38  ;;  %v1668_v14 = vmul.f32 0.0078125, %v1649_v4 }
 0x392   : > { %v1798_v32 = vmul.f32 %v3110_v11, %v1775_v3 }
 0x393   : > { %v1731_v15 = vadd.f32 1e-05, %v1715_v5  ;;  %v1700_v17 = vsub.f32 %v1668_v14, %v1684_v12  ;;  %v2660_v1 = vpop.eup %2659  ;;  %v1685_v23 = vmul.f32 %v3188_v6, %v3188_v6  ;;  %v1764_v14 = vsub.f32 %v3063_v7, %v3178_v55 }
 0x394   : > { %v3194_v18 = vadd.f32 %v3120_v21, %v1798_v32  ;;  %v1651_v19 = vpop.xlane.xlu1 %1650  ;;  %v1588_v50 = vpop.xlane.xlu0 %1587  ;;  %v1776_v25 = vmul.f32 %v2660_v1, %v1760_v20 }
 0x395   : > { %2665 = vrsqrt.f32 %v1731_v15  ;;  %v1716_v60 = vmax.f32 %v1700_v17, 0.0  ;;  %v1669_v26 = vmul.f32 0.0078125, %v1651_v19  ;;  %v1606_v8 = vmul.f32 0.0078125, %v1588_v50 }
 0x396   : > { %v1799_v53 = vmul.f32 %v3110_v11, %v1776_v25  ;;  %v1765_v15 = vsub.f32 %v3069_v63, %v3188_v6 }
 0x397   : > { %v2662_v39 = vpop.eup %2661  ;;  %v1732_v31 = vadd.f32 1e-05, %v1716_v60  ;;  %v1701_v34 = vsub.f32 %v1669_v26, %v1685_v23  ;;  %v1686_v2 = vmul.f32 %v1606_v8, %v1606_v8  ;;  %v1766_v55 = vsub.f32 %v3075_v9, %v1606_v8 }
 0x398   : > { %v1777_v35 = vmul.f32 %v2662_v39, %v1761_v28  ;;  %v1590_v36 = vpop.xlane.xlu1 %1589  ;;  %v1653_v40 = vpop.xlane.xlu0 %1652  ;;  %v3202_v22 = vadd.f32 %v3120_v21, %v1799_v53  ;;  %v1834_v9 = vmax.f32 (!%p2287_p5), %v3134_v41, 0.0  ;;  %v1835_v8 = vmax.f32 (!%p2287_p5), %v3128_v33, 0.0 }
 0x399   : > { %2667 = vrsqrt.f32 %v1732_v31  ;;  %v1717_v61 = vmax.f32 %v1701_v34, 0.0  ;;  %v1607_v43 = vmul.f32 0.0078125, %v1590_v36  ;;  %v1670_v45 = vmul.f32 0.0078125, %v1653_v40 }
 0x39a   : > { %v1800_v44 = vmul.f32 %v3110_v11, %v1777_v35  ;;  %v1837_v34 = vmax.f32 (!%p2287_p5), %v3154_v10, 0.0  ;;  %v1838_v35 = vmax.f32 (!%p2287_p5), %v3164_v27, 0.0  ;;  %v1839_v36 = vmax.f32 (!%p2287_p5), %v3174_v46, 0.0 }
 0x39b   : > { %v2664_v47 = vpop.eup %2663  ;;  %v1733_v48 = vadd.f32 1e-05, %v1717_v61  ;;  %v1702_v30 = vsub.f32 %v1670_v45, %v1686_v2  ;;  %v1687_v29 = vmul.f32 %v1607_v43, %v1607_v43  ;;  %v1767_v26 = vsub.f32 %v3081_v13, %v1607_v43 }
 0x39c   : > { %v3208_v51 = vadd.f32 %v3120_v21, %v1800_v44  ;;  %v1778_v56 = vmul.f32 %v2664_v47, %v1762_v42  ;;  %v1655_v54 = vpop.xlane.xlu1 %1654  ;;  %v1836_v13 = vmax.f32 (!%p2287_p5), %v3144_v62, 0.0  ;;  %v1850_v40 = vpack.c.bf16 (!%p2287_p5), %v1835_v8, %v1834_v9 }
 0x39d   : > { %2669 = vrsqrt.f32 %v1733_v48  ;;  %v1671_v16 = vmul.f32 0.0078125, %v1655_v54  ;;  %v1718_v59 = vmax.f32 %v1702_v30, 0.0  ;;  %v1842_v43 = vmax.f32 (!%p2287_p5), %v3202_v22, 0.0 }
 0x39e   : > { %v1801_v58 = vmul.f32 %v3110_v11, %v1778_v56  ;;  %v1851_v61 = vpack.c.bf16 (!%p2287_p5), %v1837_v34, %v1836_v13  ;;  %v1843_v44 = vmax.f32 (!%p2287_p5), %v3208_v51, 0.0  ;;  %v1852_v42 = vpack.c.bf16 (!%p2287_p5), %v1839_v36, %v1838_v35  ;;  %1858 = vst [vmem:[#allocation2] sm:$0xff] (!%p2287_p5), %v1850_v40 }
 0x39f   : > { %v2666_v49 = vpop.eup %2665  ;;  %v1703_v24 = vsub.f32 %v1671_v16, %v1687_v29  ;;  %v1734_v38 = vadd.f32 1e-05, %v1718_v59 }
 0x3a0   : > { %v3214_v3 = vadd.f32 %v3120_v21, %v1801_v58  ;;  %v1779_v12 = vmul.f32 %v2666_v49, %v1763_v57  ;;  %1859 = vst [vmem:[#allocation2 + $0x8] sm:$0xff] (!%p2287_p5), %v1851_v61  ;;  %v1854_v48 = vpack.c.bf16 (!%p2287_p5), %v1843_v44, %v1842_v43  ;;  %1860 = vst [vmem:[#allocation2 + $0x10] sm:$0xff] (!%p2287_p5), %v1852_v42 }
 0x3a1   : > { %v1719_v4 = vmax.f32 %v1703_v24, 0.0  ;;  %2671 = vrsqrt.f32 %v1734_v38 }
 0x3a2   : > { %v1802_v5 = vmul.f32 %v3110_v11, %v1779_v12  ;;  %v1844_v45 = vmax.f32 (!%p2287_p5), %v3214_v3, 0.0  ;;  %1862 = vst [vmem:[#allocation2 + $0x20] sm:$0xff] (!%p2287_p5), %v1854_v48 }
 0x3a3   : > { %v2668_v32 = vpop.eup %2667  ;;  %v1735_v20 = vadd.f32 1e-05, %v1719_v4 }
 0x3a4   : > { %v3220_v52 = vadd.f32 %v3120_v21, %v1802_v5  ;;  %v1780_v37 = vmul.f32 %v2668_v32, %v1764_v14 }
 0x3a5   : > { %2673 = vrsqrt.f32 %v1735_v20 }
 0x3a6   : > { %v1803_v17 = vmul.f32 %v3110_v11, %v1780_v37  ;;  %v1845_v47 = vmax.f32 (!%p2287_p5), %v3220_v52, 0.0 }
 0x3a7   : > { %v2670_v1 = vpop.eup %2669 }
 0x3a8   : > { %v3226_v23 = vadd.f32 %v3120_v21, %v1803_v17  ;;  %v1781_v19 = vmul.f32 %v2670_v1, %v1765_v15  ;;  %v1855_v29 = vpack.c.bf16 (!%p2287_p5), %v1845_v47, %v1844_v45 }
 0x3aa   : > { %v1804_v7 = vmul.f32 %v3110_v11, %v1781_v19  ;;  %v1846_v56 = vmax.f32 (!%p2287_p5), %v3226_v23, 0.0  ;;  %1863 = vst [vmem:[#allocation2 + $0x28] sm:$0xff] (!%p2287_p5), %v1855_v29 }
 0x3ab   : > { %v2672_v50 = vpop.eup %2671 }
 0x3ac   : > { %v3231_v25 = vadd.f32 %v3120_v21, %v1804_v7  ;;  %v1782_v60 = vmul.f32 %v2672_v50, %v1766_v55 }
 0x3ae   : > { %v1805_v63 = vmul.f32 %v3110_v11, %v1782_v60  ;;  %1833 = sbr.rel (%p2287_p5) target bundleno = 955 (0x3bb), region = 88  ;;  %v1847_v30 = vmax.f32 (!%p2287_p5), %v3231_v25, 0.0 }
 0x3af   : > { %v2674_v28 = vpop.eup %2673 }
 0x3b0   : > { %v1783_v6 = vmul.f32 %v2674_v28, %v1767_v26  ;;  %v3236_v39 = vadd.f32 %v3120_v21, %v1805_v63  ;;  %v1856_v57 = vpack.c.bf16 (!%p2287_p5), %v1847_v30, %v1846_v56 }
 0x3b2   : > { %v1806_v53 = vmul.f32 %v3110_v11, %v1783_v6  ;;  %v1840_v11 = vmax.f32 (!%p2287_p5), %v3184_v0, 0.0  ;;  %v1848_v54 = vmax.f32 (!%p2287_p5), %v3236_v39, 0.0  ;;  %1864 = vst [vmem:[#allocation2 + $0x30] sm:$0xff] (!%p2287_p5), %v1856_v57 }
 0x3b4   : > { %v3240_v31 = vadd.f32 %v3120_v21, %v1806_v53  ;;  %v1841_v21 = vmax.f32 (!%p2287_p5), %v3194_v18, 0.0 }
 0x3b6   : > { %v1853_v2 = vpack.c.bf16 %v1841_v21, %v1840_v11  ;;  %v1849_v16 = vmax.f32 %v3240_v31, 0.0 }
 0x3b8   : > { %1861 = vst [vmem:[#allocation2 + $0x18] sm:$0xff] %v1853_v2  ;;  %v1857_v58 = vpack.c.bf16 %v1849_v16, %v1848_v54 }
 0x3ba   : > { %1865 = vst [vmem:[#allocation2 + $0x38] sm:$0xff] %v1857_v58 }
 0x3bb PF: > { %p2288_p6 = scmp.ne.s32.totalorder %s2784_s19, 1 }
 0x3bc   : > { %v1871_v59 = vpack.c.bf16 (!%p2288_p6), %v3128_v33, %v3134_v41  ;;  %v2675_v49 = vld [vmem:[%s3364_s11] sm:$0xff] (!%p2288_p6)   ;;  %v2696_v24 = vmov (!%p2288_p6), 0.0   ;;  %v1872_v12 = vpack.c.bf16 (!%p2288_p6), %v3154_v10, %v3144_v62  ;;  %vm2697_vm0 = vmmov (!%p2288_p6), 0   ;;  %v2676_v33 = vld [vmem:[%s3364_s11 + $0x8] sm:$0xff] (!%p2288_p6)   ;;  %v2677_v62 = vld [vmem:[%s3364_s11 + $0x10] sm:$0xff] (!%p2288_p6)   ;;  %s3380_s27 = sld [smem:[#allocation7_spill]] (!%p2288_p6) }
 0x3bd   : > { %1869 = sbr.rel (%p2288_p6) target bundleno = 1636 (0x664), region = 92  ;;  %2492 = vmatprep.subr.bf16.mxu0 (!%p2288_p6), %v2696_v24  ;;  %2512 = vmatprep.subr.bf16.mxu1 (!%p2288_p6), %v2696_v24  ;;  %v1873_v41 = vpack.c.bf16 (!%p2288_p6), %v3174_v46, %v3164_v27  ;;  %v1874_v10 = vpack.c.bf16 (!%p2288_p6), %v3194_v18, %v3184_v0  ;;  %v2678_v27 = vld [vmem:[%s3364_s11 + $0x18] sm:$0xff] (!%p2288_p6)   ;;  %v1875_v46 = vpack.c.bf16 (!%p2288_p6), %v3208_v51, %v3202_v22  ;;  %v2679_v0 = vld [vmem:[%s3364_s11 + $0x20] sm:$0xff] (!%p2288_p6)   ;;  %v2680_v22 = vld [vmem:[%s3364_s11 + $0x28] sm:$0xff] (!%p2288_p6)   ;;  %s3381_s18 = sld [smem:[#allocation6_spill]] (!%p2288_p6)  ;;  %vm2072_vm1 = vcmask (!%p2288_p6), 523264  }
 0x3be   : > { %2493 = vmatpush3.bf16.msra.mxu0 (!%p2288_p6), %v1871_v59  ;;  %2508 = vmatprep.mubr.msk.bf16.mxu0 (!%p2288_p6), %vm2697_vm0, %v2696_v24  ;;  %v1876_v18 = vpack.c.bf16 (!%p2288_p6), %v3220_v52, %v3214_v3  ;;  %v1877_v51 = vpack.c.bf16 (!%p2288_p6), %v3231_v25, %v3226_v23  ;;  %v2681_v3 = vld [vmem:[%s3364_s11 + $0x30] sm:$0xff] (!%p2288_p6)   ;;  %v1878_v38 = vpack.c.bf16 (!%p2288_p6), %v3240_v31, %v3236_v39  ;;  %v1870_v4 = vld [vmem:[%s3363_s10] sm:$0xf] (!%p2288_p6)  ;;  %v2682_v5 = vld [vmem:[%s3364_s11 + $0x38] sm:$0xff] (!%p2288_p6)   ;;  %s3382_s3 = sld [smem:[#allocation8_spill]] (!%p2288_p6)  ;;  %s3383_s23 = sld [smem:[#allocation9_spill]] (!%p2288_p6) }
 0x3bf   : > { %2494 = vmatprep.subr.bf16.mxu0 (!%p2288_p6), %v2696_v24  ;;  %2513 = vmatpush3.bf16.msra.mxu1 (!%p2288_p6), %v2675_v49 }
 0x3c0   : > { %2528 = vmatprep.mubr.msk.bf16.mxu1 (!%p2288_p6), %vm2697_vm0, %v2696_v24  ;;  %2514 = vmatprep.subr.bf16.mxu1 (!%p2288_p6), %v2696_v24 }
 0x3c2   : > { %2495 = vmatpush3.bf16.msra.mxu0 (!%p2288_p6), %v1872_v12  ;;  %v2683_v14 = vld [vmem:[%s3380_s27] sm:$0xff] (!%p2288_p6)   ;;  %v2684_v32 = vld [vmem:[%s3380_s27 + $0x8] sm:$0xff] (!%p2288_p6)   ;;  %v2685_v1 = vld [vmem:[%s3380_s27 + $0x10] sm:$0xff] (!%p2288_p6)  }
 0x3c3   : > { %2496 = vmatprep.subr.bf16.mxu0 (!%p2288_p6), %v2696_v24  ;;  %2515 = vmatpush3.bf16.msra.mxu1 (!%p2288_p6), %v2676_v33  ;;  %v2686_v23 = vld [vmem:[%s3380_s27 + $0x18] sm:$0xff] (!%p2288_p6)   ;;  %v2289_v19 = vld [vmem:[%s3381_s18] ss:$0 sm:$0xff] (!%p2288_p6) }
 0x3c4   : > { %2516 = vmatprep.subr.bf16.mxu1 %v2696_v24  ;;  %v2298_v63 = vld [vmem:[%s3382_s3] ss:$0 sm:$0xff] }
 0x3c6   : > { %2497 = vmatpush3.bf16.msra.mxu0 %v1873_v41 }
 0x3c7   : > { %2498 = vmatprep.subr.bf16.mxu0 %v2696_v24  ;;  %2517 = vmatpush3.bf16.msra.mxu1 %v2677_v62 }
 0x3c8   : > { %2518 = vmatprep.subr.bf16.mxu1 %v2696_v24 }
 0x3ca   : > { %2499 = vmatpush3.bf16.msra.mxu0 %v1874_v10 }
 0x3cb   : > { %2500 = vmatprep.subr.bf16.mxu0 %v2696_v24  ;;  %2519 = vmatpush3.bf16.msra.mxu1 %v2678_v27 }
 0x3cc   : > { %2520 = vmatprep.subr.bf16.mxu1 %v2696_v24 }
 0x3ce   : > { %2501 = vmatpush3.bf16.msra.mxu0 %v1875_v46 }
 0x3cf   : > { %2502 = vmatprep.subr.bf16.mxu0 %v2696_v24  ;;  %2521 = vmatpush3.bf16.msra.mxu1 %v2679_v0 }
 0x3d0   : > { %2522 = vmatprep.subr.bf16.mxu1 %v2696_v24 }
 0x3d2   : > { %2503 = vmatpush3.bf16.msra.mxu0 %v1876_v18 }
 0x3d3   : > { %2504 = vmatprep.subr.bf16.mxu0 %v2696_v24  ;;  %2523 = vmatpush3.bf16.msra.mxu1 %v2680_v22 }
 0x3d4   : > { %2524 = vmatprep.subr.bf16.mxu1 %v2696_v24 }
 0x3d6   : > { %2505 = vmatpush3.bf16.msra.mxu0 %v1877_v51 }
 0x3d7   : > { %2506 = vmatprep.subr.bf16.mxu0 %v2696_v24  ;;  %2525 = vmatpush3.bf16.msra.mxu1 %v2681_v3 }
 0x3d8   : > { %2526 = vmatprep.subr.bf16.mxu1 %v2696_v24 }
 0x3da   : > { %2507 = vmatpush3.bf16.msra.mxu0 %v1878_v38 }
 0x3db   : > { %2532 = vmatprep.subr.bf16.mxu0 %v2696_v24  ;;  %2527 = vmatpush3.bf16.msra.mxu1 %v2682_v5 }
 0x3dd   : > { %2509 = vmatmul.mubr.bf16.vlgmr.msra.gmra.mrb[0].mxu0 %v1870_v4 }
 0x3de   : > { %2540 = vmatprep.mubr.msk.bf16.mxu0 %vm2697_vm0, %v2696_v24  ;;  %2533 = vmatpush3.bf16.msra.mxu0 %v2683_v14 }
 0x3df   : > { %2534 = vmatprep.subr.bf16.mxu0 %v2696_v24 }
 0x3e2   : > { %2535 = vmatpush3.bf16.msra.mxu0 %v2684_v32 }
 0x3e3   : > { %2536 = vmatprep.subr.bf16.mxu0 %v2696_v24 }
 0x3e6   : > { %2537 = vmatpush3.bf16.msra.mxu0 %v2685_v1 }
 0x3e7   : > { %2538 = vmatprep.subr.bf16.mxu0 %v2696_v24 }
 0x3ea   : > { %2539 = vmatpush3.bf16.msra.mxu0 %v2686_v23 }
 0x4b0   : > { %v1913_v20 = vpop.f32.mrb[0].mxu0 }
 0x4b1   : > { %v1919_v52 = vpack.c.bf16 %v1913_v20, %v1913_v20  ;;  %v2510_v37 = vpop.f32.mrb[1].mxu0 }
 0x4b2   : > { %v1916_v15 = vpop.f32.mrb[2].mxu0 }
 0x4b3   : > { %v2511_v17 = vpop.f32.mrb[3].mxu0  ;;  %2529 = vmatmul.mubr.bf16.vlgmr.msra.gmra.mrb[0].mxu1 %v1919_v52 }
 0x586   : > { %v2025_v7 = vpop.f32.mrb[0].mxu1 }
 0x587   : > { %v2026_v55 = vadd.f32 %v2289_v19, %v2025_v7  ;;  %v2530_v50 = vpop.f32.mrb[1].mxu1 }
 0x588   : > { %v2028_v25 = vpop.f32.mrb[2].mxu1 }
 0x589   : > { %v2031_v60 = vmax.f32 %v2026_v55, 0.0  ;;  %v2531_v26 = vpop.f32.mrb[3].mxu1 }
 0x58b   : > { %v2032_v28 = vpack.c.bf16 %v2031_v60, %v2031_v60 }
 0x58d   : > { %2541 = vmatmul.mubr.msk.bf16.vlgmr.msra.gmra.mrb[4].mxu0 %vm2072_vm1, %v2032_v28 }
 0x660   : > { %v2110_v6 = vpop.f32.mrb[4].mxu0 }
 0x661   : > { %v2111_v39 = vadd.f32 %v2298_v63, %v2110_v6  ;;  %v2542_v53 = vpop.f32.mrb[5].mxu0 }
 0x662   : > { %v2113_v31 = vpop.f32.mrb[6].mxu0 }
 0x663   : > { %2116 = vst [vmem:[%s3383_s23] sm:$0xff] %v2111_v39  ;;  %v2543_v9 = vpop.f32.mrb[7].mxu0 }
 0x664 PF: > { %s3384_s14 = sld [smem:[#allocation3_spill]] }
 0x66a   : > { %s25_s18 = sadd.s32 1, %s3384_s14  }
 0x66b   : > { %p22_p7 = scmp.ge.s32.totalorder %s25_s18, 4  }
 0x66d   :  { %24 = sbr.rel (!%p22_p7) target bundleno = 7 (0x7), region = 136 }

</bundles_post_ra>
